<compile_context>
chip_gen: v6e
topology: v6e:2x2x1
jax: 0.10.0
libtpu: 0.0.40
codegen_flags: <defaults>
</compile_context>

<pallas_src>
import functools

import jax
import jax.numpy as jnp
from jax import lax
from jax.experimental import pallas as pl
from jax.experimental.pallas import tpu as pltpu


# --------------------------------------------------------------------------
# Pallas kernel: one grid step == one batch element, everything in vregs.
# --------------------------------------------------------------------------
def mc_kernel(x_ref,                           # (1, Hp, Wp*Cin) padded input
              w1_ref, b1_ref, s1_ref, t1_ref,  # stage 1: conv3x3 + ReLU + BN
              wd_ref, bd_ref, s2_ref, t2_ref,  # stage 2: depthwise3x3 + ReLU + BN
              wp_ref, bp_ref, s3_ref, t3_ref,  # stage 3: conv1x1 + ReLU + BN
              out_ref,                         # (1, H, W*Cout)
              *, cout, width):
    H, WC = out_ref.shape[1], out_ref.shape[2]

    x = x_ref[0]                               # (Hp, Wp*Cin) f32

    # ---------------- Stage 1: 3x3 conv as 3 block-Toeplitz matmuls --------
    # w1_ref[dy] has shape (Wp*Cin, W*Cout); result is already lane-dense.
    acc1 = jnp.zeros((H, WC), jnp.float32)
    for dy in range(3):
        acc1 = acc1 + jnp.dot(x[dy:dy + H, :], w1_ref[dy],
                              preferred_element_type=jnp.float32)
    y1 = jnp.maximum(acc1 + b1_ref[...], 0.0) * s1_ref[...] + t1_ref[...]

    # ---------------- Stage 2: depthwise 3x3 via XLU rolls + border masks ---
    row = lax.broadcasted_iota(jnp.int32, (H, WC), 0)
    col = lax.broadcasted_iota(jnp.int32, (H, WC), 1)
    ok_top = row >= 1                      # needed when dy == -1
    ok_bot = row < (H - 1)                 # needed when dy == +1
    ok_lft = col >= cout                   # needed when dx == -1
    ok_rgt = col < (width - 1) * cout      # needed when dx == +1

    wd = wd_ref[...]                       # (9, W*Cout)
    acc2 = jnp.zeros((H, WC), jnp.float32)
    for tap in range(9):
        dy, dx = tap // 3 - 1, tap % 3 - 1
        t = y1
        if dy != 0:
            t = pltpu.roll(t, (-dy) % H, 0)           # sublane rotate (XLU)
        if dx != 0:
            t = pltpu.roll(t, (-dx * cout) % WC, 1)   # lane rotate (XLU)
        m = None
        if dy == -1:
            m = ok_top
        elif dy == 1:
            m = ok_bot
        if dx == -1:
            m = ok_lft if m is None else m & ok_lft
        elif dx == 1:
            m = ok_rgt if m is None else m & ok_rgt
        if m is not None:
            t = jnp.where(m, t, 0.0)
        acc2 = acc2 + t * wd[tap:tap + 1, :]
    y2 = jnp.maximum(acc2 + bd_ref[...], 0.0) * s2_ref[...] + t2_ref[...]
    x2 = y2 + y1                                   # residual add (x += residual)

    # ---------------- Stage 3: 1x1 conv as block-diagonal matmul ------------
    acc3 = jnp.dot(x2, wp_ref[...], preferred_element_type=jnp.float32)
    y3 = jnp.maximum(acc3 + bp_ref[...], 0.0) * s3_ref[...] + t3_ref[...]
    out_ref[0] = y3.astype(out_ref.dtype)          # lane-dense (128-wide) store


# --------------------------------------------------------------------------
# Wrapper: builds lane-dense weights, sets BlockSpecs, launches the kernel.
# --------------------------------------------------------------------------
@jax.jit
def mc_forward(x_nchw, params):
    x = jnp.transpose(x_nchw, (0, 2, 3, 1)).astype(jnp.float32)   # NHWC
    N, H, W, Cin = x.shape
    Cout = params["w1"].shape[-1]
    Hp, Wp = H + 2, W + 2
    WC = W * Cout

    # pad (fuses with the transpose) and flatten W,Cin into one lane axis
    xp = jnp.pad(x, ((0, 0), (1, 1), (1, 1), (0, 0))).reshape(N, Hp, Wp * Cin)

    # --- weight preprocessing (tiny; computed per call) ---------------------
    # Block-Toeplitz conv1 weights: w1_big[dy, wp*Cin + c, w*Cout + co]
    #   = w1[dy, wp - w, c, co] if 0 <= wp - w <= 2 else 0.
    w1 = params["w1"].astype(jnp.float32)                 # (3,3,Cin,Cout) HWIO
    dxm = jnp.arange(Wp)[:, None] - jnp.arange(W)[None, :]          # (Wp, W)
    valid = (dxm >= 0) & (dxm <= 2)
    g = w1[:, jnp.clip(dxm, 0, 2)]                        # (3, Wp, W, Cin, Cout)
    g = jnp.where(valid[None, :, :, None, None], g, 0.0)
    w1_big = jnp.transpose(g, (0, 1, 3, 2, 4)).reshape(3, Wp * Cin, WC)

    # Depthwise taps tiled across W (lane-dense per-channel weights).
    wd_t = jnp.tile(params["wd"].astype(jnp.float32).reshape(9, 1, Cout),
                    (1, W, 1)).reshape(9, WC)

    # Pointwise conv as a block-diagonal (W*Cout, W*Cout) matrix.
    wp_big = jnp.kron(jnp.eye(W, dtype=jnp.float32),
                      params["wp"].astype(jnp.float32))

    def cvec(v):                                          # per-channel -> lane-dense
        return jnp.tile(v.astype(jnp.float32), W).reshape(1, WC)

    args = (xp,
            w1_big, cvec(params["b1"]), cvec(params["s1"]), cvec(params["t1"]),
            wd_t,   cvec(params["bd"]), cvec(params["s2"]), cvec(params["t2"]),
            wp_big, cvec(params["bp"]), cvec(params["s3"]), cvec(params["t3"]))

    def whole(a):                                         # invariant params: constant
        return pl.BlockSpec(a.shape, lambda n: (0,) * a.ndim)   # index -> no re-DMA

    in_specs = [pl.BlockSpec((1, Hp, Wp * Cin), lambda n: (n, 0, 0))]
    in_specs += [whole(a) for a in args[1:]]

    kernel = functools.partial(mc_kernel, cout=Cout, width=W)
    out2d = pl.pallas_call(
        kernel,
        out_shape=jax.ShapeDtypeStruct((N, H, WC), jnp.float32),
        grid=(N,),
        in_specs=in_specs,
        out_specs=pl.BlockSpec((1, H, WC), lambda n: (n, 0, 0)),
        compiler_params=pltpu.CompilerParams(
            dimension_semantics=("parallel",)),     # batch shards across TCs on v7x
    )(*args)

    out_nhwc = out2d.reshape(N, H, W, Cout)
    return jnp.transpose(out_nhwc, (0, 3, 1, 2))          # back to NCHW


# --------------------------------------------------------------------------
# Deterministic parameter construction and a pure-JAX reference (lax.conv).
# --------------------------------------------------------------------------
def make_params(key, cin, cout):
    ks = jax.random.split(key, 16)
    eps = 1e-5

    def bn(kg, kb, km, kv):
        gamma = 1.0 + 0.1 * jax.random.normal(kg, (cout,), jnp.float32)
        beta = 0.1 * jax.random.normal(kb, (cout,), jnp.float32)
        mean = 0.1 * jax.random.normal(km, (cout,), jnp.float32)
        var = 0.5 + jnp.abs(jax.random.normal(kv, (cout,), jnp.float32)) * 0.5
        s = gamma / jnp.sqrt(var + eps)
        t = beta - mean * s
        return s, t

    s1, t1 = bn(ks[3], ks[4], ks[5], ks[6])
    s2, t2 = bn(ks[7], ks[8], ks[9], ks[10])
    s3, t3 = bn(ks[11], ks[12], ks[13], ks[14])

    return dict(
        w1=0.1 * jax.random.normal(ks[0], (3, 3, cin, cout), jnp.float32),   # HWIO
        b1=0.1 * jax.random.normal(ks[1], (cout,), jnp.float32),
        wd=0.1 * jax.random.normal(ks[2], (3, 3, cout), jnp.float32),        # HWC depthwise
        bd=0.1 * jax.random.normal(ks[15], (cout,), jnp.float32),
        wp=0.1 * jax.random.normal(jax.random.fold_in(key, 99),
                                   (cout, cout), jnp.float32),               # (Cin=Cout, Cout)
        bp=0.1 * jax.random.normal(jax.random.fold_in(key, 100),
                                   (cout,), jnp.float32),
        s1=s1, t1=t1, s2=s2, t2=t2, s3=s3, t3=t3,
    )


def mc_reference(x_nchw, params):
    x = jnp.transpose(x_nchw, (0, 2, 3, 1)).astype(jnp.float32)  # NHWC
    Cout = params["w1"].shape[-1]
    dn = ("NHWC", "HWIO", "NHWC")

    def stage(y, s, t):
        return jnp.maximum(y, 0.0) * s + t

    y = lax.conv_general_dilated(x, params["w1"], (1, 1), "SAME",
                                 dimension_numbers=dn) + params["b1"]
    y1 = stage(y, params["s1"], params["t1"])
    wd = params["wd"].reshape(3, 3, 1, Cout)
    y = lax.conv_general_dilated(y1, wd, (1, 1), "SAME",
                                 dimension_numbers=dn,
                                 feature_group_count=Cout) + params["bd"]
    y2 = stage(y, params["s2"], params["t2"]) + y1
    y = lax.conv_general_dilated(y2, params["wp"].reshape(1, 1, Cout, Cout),
                                 (1, 1), "SAME",
                                 dimension_numbers=dn) + params["bp"]
    y3 = stage(y, params["s3"], params["t3"])
    return jnp.transpose(y3, (0, 3, 1, 2))


if __name__ == "__main__":
    key = jax.random.PRNGKey(0)
    k_x, k_p = jax.random.split(key)

    N, Cin, Cout, H, W = 2, 4, 8, 16, 16
    x = jax.random.normal(k_x, (N, Cin, H, W), jnp.float32)   # NCHW like PyTorch
    params = make_params(k_p, Cin, Cout)

    out = jax.block_until_ready(mc_forward(x, params))
    ref = jax.block_until_ready(mc_reference(x, params))

    assert out.shape == (N, Cout, H, W)
    assert jnp.allclose(out, ref, rtol=2e-4, atol=2e-4), (
        float(jnp.max(jnp.abs(out - ref))))

    print("KERNEL_OK")
</pallas_src>

<mosaic_0001>
module attributes {stable_mosaic.version = 11 : i64} {
  func.func @mc_kernel(%arg0: i32, %arg1: memref<1x18x72xf32, #tpu.memory_space<vmem>>, %arg2: memref<3x72x128xf32, #tpu.memory_space<vmem>>, %arg3: memref<1x128xf32, #tpu.memory_space<vmem>>, %arg4: memref<1x128xf32, #tpu.memory_space<vmem>>, %arg5: memref<1x128xf32, #tpu.memory_space<vmem>>, %arg6: memref<9x128xf32, #tpu.memory_space<vmem>>, %arg7: memref<1x128xf32, #tpu.memory_space<vmem>>, %arg8: memref<1x128xf32, #tpu.memory_space<vmem>>, %arg9: memref<1x128xf32, #tpu.memory_space<vmem>>, %arg10: memref<128x128xf32, #tpu.memory_space<vmem>>, %arg11: memref<1x128xf32, #tpu.memory_space<vmem>>, %arg12: memref<1x128xf32, #tpu.memory_space<vmem>>, %arg13: memref<1x128xf32, #tpu.memory_space<vmem>>, %arg14: memref<1x16x128xf32, #tpu.memory_space<vmem>>) attributes {dimension_semantics = [#tpu.dimension_semantics<parallel>], iteration_bounds = array<i64: 2>, scalar_prefetch = 0 : i64, scratch_operands = 0 : i64, tpu.core_type = #tpu.core_type<tc>, window_params = [{transform_indices = @transform_0, window_bounds = array<i64: 1, 18, 72>}, {pipeline_mode = #tpu.pipeline_mode<synchronous>, transform_indices = @transform_1, window_bounds = array<i64: 3, 72, 128>}, {pipeline_mode = #tpu.pipeline_mode<synchronous>, transform_indices = @transform_2, window_bounds = array<i64: 1, 128>}, {pipeline_mode = #tpu.pipeline_mode<synchronous>, transform_indices = @transform_3, window_bounds = array<i64: 1, 128>}, {pipeline_mode = #tpu.pipeline_mode<synchronous>, transform_indices = @transform_4, window_bounds = array<i64: 1, 128>}, {pipeline_mode = #tpu.pipeline_mode<synchronous>, transform_indices = @transform_5, window_bounds = array<i64: 9, 128>}, {pipeline_mode = #tpu.pipeline_mode<synchronous>, transform_indices = @transform_6, window_bounds = array<i64: 1, 128>}, {pipeline_mode = #tpu.pipeline_mode<synchronous>, transform_indices = @transform_7, window_bounds = array<i64: 1, 128>}, {pipeline_mode = #tpu.pipeline_mode<synchronous>, transform_indices = @transform_8, window_bounds = array<i64: 1, 128>}, {pipeline_mode = #tpu.pipeline_mode<synchronous>, transform_indices = @transform_9, window_bounds = array<i64: 128, 128>}, {pipeline_mode = #tpu.pipeline_mode<synchronous>, transform_indices = @transform_10, window_bounds = array<i64: 1, 128>}, {pipeline_mode = #tpu.pipeline_mode<synchronous>, transform_indices = @transform_11, window_bounds = array<i64: 1, 128>}, {pipeline_mode = #tpu.pipeline_mode<synchronous>, transform_indices = @transform_12, window_bounds = array<i64: 1, 128>}, {transform_indices = @transform_13, window_bounds = array<i64: 1, 16, 128>}]} {
    %c0 = arith.constant 0 : index
    %c0_0 = arith.constant 0 : index
    %c0_1 = arith.constant 0 : index
    %0 = vector.load %arg1[%c0, %c0_0, %c0_1] : memref<1x18x72xf32, #tpu.memory_space<vmem>>, vector<1x18x72xf32>
    %1 = vector.shape_cast %0 : vector<1x18x72xf32> to vector<18x72xf32>
    %cst = arith.constant 0.000000e+00 : f32
    %2 = vector.broadcast %cst : f32 to vector<16x128xf32>
    %3 = vector.extract_strided_slice %1 {offsets = [0, 0], sizes = [16, 72], strides = [1, 1]} : vector<18x72xf32> to vector<16x72xf32>
    %c0_2 = arith.constant 0 : index
    %c0_3 = arith.constant 0 : index
    %c0_4 = arith.constant 0 : index
    %4 = vector.load %arg2[%c0_2, %c0_3, %c0_4] : memref<3x72x128xf32, #tpu.memory_space<vmem>>, vector<1x72x128xf32>
    %5 = vector.shape_cast %4 : vector<1x72x128xf32> to vector<72x128xf32>
    %cst_5 = arith.constant dense<0.000000e+00> : vector<16x128xf32>
    %6 = tpu.matmul %3, %5, %cst_5 {dimension_numbers = #tpu.dot_dimension_numbers<[1], [0], [0], [1], [0, 0, 1, 1], [], []>} : vector<16x72xf32>, vector<72x128xf32>, vector<16x128xf32> -> vector<16x128xf32>
    %7 = arith.addf %2, %6 : vector<16x128xf32>
    %8 = vector.extract_strided_slice %1 {offsets = [1, 0], sizes = [16, 72], strides = [1, 1]} : vector<18x72xf32> to vector<16x72xf32>
    %c1 = arith.constant 1 : index
    %c0_6 = arith.constant 0 : index
    %c0_7 = arith.constant 0 : index
    %9 = vector.load %arg2[%c1, %c0_6, %c0_7] : memref<3x72x128xf32, #tpu.memory_space<vmem>>, vector<1x72x128xf32>
    %10 = vector.shape_cast %9 : vector<1x72x128xf32> to vector<72x128xf32>
    %cst_8 = arith.constant dense<0.000000e+00> : vector<16x128xf32>
    %11 = tpu.matmul %8, %10, %cst_8 {dimension_numbers = #tpu.dot_dimension_numbers<[1], [0], [0], [1], [0, 0, 1, 1], [], []>} : vector<16x72xf32>, vector<72x128xf32>, vector<16x128xf32> -> vector<16x128xf32>
    %12 = arith.addf %7, %11 : vector<16x128xf32>
    %13 = vector.extract_strided_slice %1 {offsets = [2, 0], sizes = [16, 72], strides = [1, 1]} : vector<18x72xf32> to vector<16x72xf32>
    %c2 = arith.constant 2 : index
    %c0_9 = arith.constant 0 : index
    %c0_10 = arith.constant 0 : index
    %14 = vector.load %arg2[%c2, %c0_9, %c0_10] : memref<3x72x128xf32, #tpu.memory_space<vmem>>, vector<1x72x128xf32>
    %15 = vector.shape_cast %14 : vector<1x72x128xf32> to vector<72x128xf32>
    %cst_11 = arith.constant dense<0.000000e+00> : vector<16x128xf32>
    %16 = tpu.matmul %13, %15, %cst_11 {dimension_numbers = #tpu.dot_dimension_numbers<[1], [0], [0], [1], [0, 0, 1, 1], [], []>} : vector<16x72xf32>, vector<72x128xf32>, vector<16x128xf32> -> vector<16x128xf32>
    %17 = arith.addf %12, %16 : vector<16x128xf32>
    %c0_12 = arith.constant 0 : index
    %c0_13 = arith.constant 0 : index
    %18 = vector.load %arg3[%c0_12, %c0_13] : memref<1x128xf32, #tpu.memory_space<vmem>>, vector<1x128xf32>
    %19 = vector.broadcast %18 : vector<1x128xf32> to vector<16x128xf32>
    %20 = arith.addf %17, %19 : vector<16x128xf32>
    %cst_14 = arith.constant 0.000000e+00 : f32
    %21 = vector.broadcast %cst_14 : f32 to vector<16x128xf32>
    %22 = arith.maximumf %20, %21 : vector<16x128xf32>
    %c0_15 = arith.constant 0 : index
    %c0_16 = arith.constant 0 : index
    %23 = vector.load %arg4[%c0_15, %c0_16] : memref<1x128xf32, #tpu.memory_space<vmem>>, vector<1x128xf32>
    %24 = vector.broadcast %23 : vector<1x128xf32> to vector<16x128xf32>
    %25 = arith.mulf %22, %24 : vector<16x128xf32>
    %c0_17 = arith.constant 0 : index
    %c0_18 = arith.constant 0 : index
    %26 = vector.load %arg5[%c0_17, %c0_18] : memref<1x128xf32, #tpu.memory_space<vmem>>, vector<1x128xf32>
    %27 = vector.broadcast %26 : vector<1x128xf32> to vector<16x128xf32>
    %28 = arith.addf %25, %27 : vector<16x128xf32>
    %29 = tpu.iota {dimensions = array<i32: 0>} : vector<16x128xi32>
    %30 = tpu.iota {dimensions = array<i32: 1>} : vector<16x128xi32>
    %c1_i32 = arith.constant 1 : i32
    %31 = vector.broadcast %c1_i32 : i32 to vector<16x128xi32>
    %32 = arith.cmpi sge, %29, %31 : vector<16x128xi32>
    %c15_i32 = arith.constant 15 : i32
    %33 = vector.broadcast %c15_i32 : i32 to vector<16x128xi32>
    %34 = arith.cmpi slt, %29, %33 : vector<16x128xi32>
    %c8_i32 = arith.constant 8 : i32
    %35 = vector.broadcast %c8_i32 : i32 to vector<16x128xi32>
    %36 = arith.cmpi sge, %30, %35 : vector<16x128xi32>
    %c120_i32 = arith.constant 120 : i32
    %37 = vector.broadcast %c120_i32 : i32 to vector<16x128xi32>
    %38 = arith.cmpi slt, %30, %37 : vector<16x128xi32>
    %c0_19 = arith.constant 0 : index
    %c0_20 = arith.constant 0 : index
    %39 = vector.load %arg6[%c0_19, %c0_20] : memref<9x128xf32, #tpu.memory_space<vmem>>, vector<9x128xf32>
    %cst_21 = arith.constant 0.000000e+00 : f32
    %40 = vector.broadcast %cst_21 : f32 to vector<16x128xf32>
    %c1_i32_22 = arith.constant 1 : i32
    %41 = tpu.dynamic_rotate %28 by %c1_i32_22 dim 0 : vector<16x128xf32>, i32 -> vector<16x128xf32>
    %c8_i32_23 = arith.constant 8 : i32
    %42 = tpu.dynamic_rotate %41 by %c8_i32_23 dim 1 : vector<16x128xf32>, i32 -> vector<16x128xf32>
    %43 = arith.andi %32, %36 : vector<16x128xi1>
    %cst_24 = arith.constant 0.000000e+00 : f32
    %44 = vector.broadcast %cst_24 : f32 to vector<16x128xf32>
    %45 = arith.select %43, %42, %44 : vector<16x128xi1>, vector<16x128xf32>
    %46 = vector.extract_strided_slice %39 {offsets = [0, 0], sizes = [1, 128], strides = [1, 1]} : vector<9x128xf32> to vector<1x128xf32>
    %47 = vector.broadcast %46 : vector<1x128xf32> to vector<16x128xf32>
    %48 = arith.mulf %45, %47 : vector<16x128xf32>
    %49 = arith.addf %40, %48 : vector<16x128xf32>
    %c1_i32_25 = arith.constant 1 : i32
    %50 = tpu.dynamic_rotate %28 by %c1_i32_25 dim 0 : vector<16x128xf32>, i32 -> vector<16x128xf32>
    %cst_26 = arith.constant 0.000000e+00 : f32
    %51 = vector.broadcast %cst_26 : f32 to vector<16x128xf32>
    %52 = arith.select %32, %50, %51 : vector<16x128xi1>, vector<16x128xf32>
    %53 = vector.extract_strided_slice %39 {offsets = [1, 0], sizes = [1, 128], strides = [1, 1]} : vector<9x128xf32> to vector<1x128xf32>
    %54 = vector.broadcast %53 : vector<1x128xf32> to vector<16x128xf32>
    %55 = arith.mulf %52, %54 : vector<16x128xf32>
    %56 = arith.addf %49, %55 : vector<16x128xf32>
    %c1_i32_27 = arith.constant 1 : i32
    %57 = tpu.dynamic_rotate %28 by %c1_i32_27 dim 0 : vector<16x128xf32>, i32 -> vector<16x128xf32>
    %c120_i32_28 = arith.constant 120 : i32
    %58 = tpu.dynamic_rotate %57 by %c120_i32_28 dim 1 : vector<16x128xf32>, i32 -> vector<16x128xf32>
    %59 = arith.andi %32, %38 : vector<16x128xi1>
    %cst_29 = arith.constant 0.000000e+00 : f32
    %60 = vector.broadcast %cst_29 : f32 to vector<16x128xf32>
    %61 = arith.select %59, %58, %60 : vector<16x128xi1>, vector<16x128xf32>
    %62 = vector.extract_strided_slice %39 {offsets = [2, 0], sizes = [1, 128], strides = [1, 1]} : vector<9x128xf32> to vector<1x128xf32>
    %63 = vector.broadcast %62 : vector<1x128xf32> to vector<16x128xf32>
    %64 = arith.mulf %61, %63 : vector<16x128xf32>
    %65 = arith.addf %56, %64 : vector<16x128xf32>
    %c8_i32_30 = arith.constant 8 : i32
    %66 = tpu.dynamic_rotate %28 by %c8_i32_30 dim 1 : vector<16x128xf32>, i32 -> vector<16x128xf32>
    %cst_31 = arith.constant 0.000000e+00 : f32
    %67 = vector.broadcast %cst_31 : f32 to vector<16x128xf32>
    %68 = arith.select %36, %66, %67 : vector<16x128xi1>, vector<16x128xf32>
    %69 = vector.extract_strided_slice %39 {offsets = [3, 0], sizes = [1, 128], strides = [1, 1]} : vector<9x128xf32> to vector<1x128xf32>
    %70 = vector.broadcast %69 : vector<1x128xf32> to vector<16x128xf32>
    %71 = arith.mulf %68, %70 : vector<16x128xf32>
    %72 = arith.addf %65, %71 : vector<16x128xf32>
    %73 = vector.extract_strided_slice %39 {offsets = [4, 0], sizes = [1, 128], strides = [1, 1]} : vector<9x128xf32> to vector<1x128xf32>
    %74 = vector.broadcast %73 : vector<1x128xf32> to vector<16x128xf32>
    %75 = arith.mulf %28, %74 : vector<16x128xf32>
    %76 = arith.addf %72, %75 : vector<16x128xf32>
    %c120_i32_32 = arith.constant 120 : i32
    %77 = tpu.dynamic_rotate %28 by %c120_i32_32 dim 1 : vector<16x128xf32>, i32 -> vector<16x128xf32>
    %cst_33 = arith.constant 0.000000e+00 : f32
    %78 = vector.broadcast %cst_33 : f32 to vector<16x128xf32>
    %79 = arith.select %38, %77, %78 : vector<16x128xi1>, vector<16x128xf32>
    %80 = vector.extract_strided_slice %39 {offsets = [5, 0], sizes = [1, 128], strides = [1, 1]} : vector<9x128xf32> to vector<1x128xf32>
    %81 = vector.broadcast %80 : vector<1x128xf32> to vector<16x128xf32>
    %82 = arith.mulf %79, %81 : vector<16x128xf32>
    %83 = arith.addf %76, %82 : vector<16x128xf32>
    %c15_i32_34 = arith.constant 15 : i32
    %84 = tpu.dynamic_rotate %28 by %c15_i32_34 dim 0 : vector<16x128xf32>, i32 -> vector<16x128xf32>
    %c8_i32_35 = arith.constant 8 : i32
    %85 = tpu.dynamic_rotate %84 by %c8_i32_35 dim 1 : vector<16x128xf32>, i32 -> vector<16x128xf32>
    %86 = arith.andi %34, %36 : vector<16x128xi1>
    %cst_36 = arith.constant 0.000000e+00 : f32
    %87 = vector.broadcast %cst_36 : f32 to vector<16x128xf32>
    %88 = arith.select %86, %85, %87 : vector<16x128xi1>, vector<16x128xf32>
    %89 = vector.extract_strided_slice %39 {offsets = [6, 0], sizes = [1, 128], strides = [1, 1]} : vector<9x128xf32> to vector<1x128xf32>
    %90 = vector.broadcast %89 : vector<1x128xf32> to vector<16x128xf32>
    %91 = arith.mulf %88, %90 : vector<16x128xf32>
    %92 = arith.addf %83, %91 : vector<16x128xf32>
    %c15_i32_37 = arith.constant 15 : i32
    %93 = tpu.dynamic_rotate %28 by %c15_i32_37 dim 0 : vector<16x128xf32>, i32 -> vector<16x128xf32>
    %cst_38 = arith.constant 0.000000e+00 : f32
    %94 = vector.broadcast %cst_38 : f32 to vector<16x128xf32>
    %95 = arith.select %34, %93, %94 : vector<16x128xi1>, vector<16x128xf32>
    %96 = vector.extract_strided_slice %39 {offsets = [7, 0], sizes = [1, 128], strides = [1, 1]} : vector<9x128xf32> to vector<1x128xf32>
    %97 = vector.broadcast %96 : vector<1x128xf32> to vector<16x128xf32>
    %98 = arith.mulf %95, %97 : vector<16x128xf32>
    %99 = arith.addf %92, %98 : vector<16x128xf32>
    %c15_i32_39 = arith.constant 15 : i32
    %100 = tpu.dynamic_rotate %28 by %c15_i32_39 dim 0 : vector<16x128xf32>, i32 -> vector<16x128xf32>
    %c120_i32_40 = arith.constant 120 : i32
    %101 = tpu.dynamic_rotate %100 by %c120_i32_40 dim 1 : vector<16x128xf32>, i32 -> vector<16x128xf32>
    %102 = arith.andi %34, %38 : vector<16x128xi1>
    %cst_41 = arith.constant 0.000000e+00 : f32
    %103 = vector.broadcast %cst_41 : f32 to vector<16x128xf32>
    %104 = arith.select %102, %101, %103 : vector<16x128xi1>, vector<16x128xf32>
    %105 = vector.extract_strided_slice %39 {offsets = [8, 0], sizes = [1, 128], strides = [1, 1]} : vector<9x128xf32> to vector<1x128xf32>
    %106 = vector.broadcast %105 : vector<1x128xf32> to vector<16x128xf32>
    %107 = arith.mulf %104, %106 : vector<16x128xf32>
    %108 = arith.addf %99, %107 : vector<16x128xf32>
    %c0_42 = arith.constant 0 : index
    %c0_43 = arith.constant 0 : index
    %109 = vector.load %arg7[%c0_42, %c0_43] : memref<1x128xf32, #tpu.memory_space<vmem>>, vector<1x128xf32>
    %110 = vector.broadcast %109 : vector<1x128xf32> to vector<16x128xf32>
    %111 = arith.addf %108, %110 : vector<16x128xf32>
    %cst_44 = arith.constant 0.000000e+00 : f32
    %112 = vector.broadcast %cst_44 : f32 to vector<16x128xf32>
    %113 = arith.maximumf %111, %112 : vector<16x128xf32>
    %c0_45 = arith.constant 0 : index
    %c0_46 = arith.constant 0 : index
    %114 = vector.load %arg8[%c0_45, %c0_46] : memref<1x128xf32, #tpu.memory_space<vmem>>, vector<1x128xf32>
    %115 = vector.broadcast %114 : vector<1x128xf32> to vector<16x128xf32>
    %116 = arith.mulf %113, %115 : vector<16x128xf32>
    %c0_47 = arith.constant 0 : index
    %c0_48 = arith.constant 0 : index
    %117 = vector.load %arg9[%c0_47, %c0_48] : memref<1x128xf32, #tpu.memory_space<vmem>>, vector<1x128xf32>
    %118 = vector.broadcast %117 : vector<1x128xf32> to vector<16x128xf32>
    %119 = arith.addf %116, %118 : vector<16x128xf32>
    %120 = arith.addf %119, %28 : vector<16x128xf32>
    %c0_49 = arith.constant 0 : index
    %c0_50 = arith.constant 0 : index
    %121 = vector.load %arg10[%c0_49, %c0_50] : memref<128x128xf32, #tpu.memory_space<vmem>>, vector<128x128xf32>
    %cst_51 = arith.constant dense<0.000000e+00> : vector<16x128xf32>
    %122 = tpu.matmul %120, %121, %cst_51 {dimension_numbers = #tpu.dot_dimension_numbers<[1], [0], [0], [1], [0, 0, 1, 1], [], []>} : vector<16x128xf32>, vector<128x128xf32>, vector<16x128xf32> -> vector<16x128xf32>
    %c0_52 = arith.constant 0 : index
    %c0_53 = arith.constant 0 : index
    %123 = vector.load %arg11[%c0_52, %c0_53] : memref<1x128xf32, #tpu.memory_space<vmem>>, vector<1x128xf32>
    %124 = vector.broadcast %123 : vector<1x128xf32> to vector<16x128xf32>
    %125 = arith.addf %122, %124 : vector<16x128xf32>
    %cst_54 = arith.constant 0.000000e+00 : f32
    %126 = vector.broadcast %cst_54 : f32 to vector<16x128xf32>
    %127 = arith.maximumf %125, %126 : vector<16x128xf32>
    %c0_55 = arith.constant 0 : index
    %c0_56 = arith.constant 0 : index
    %128 = vector.load %arg12[%c0_55, %c0_56] : memref<1x128xf32, #tpu.memory_space<vmem>>, vector<1x128xf32>
    %129 = vector.broadcast %128 : vector<1x128xf32> to vector<16x128xf32>
    %130 = arith.mulf %127, %129 : vector<16x128xf32>
    %c0_57 = arith.constant 0 : index
    %c0_58 = arith.constant 0 : index
    %131 = vector.load %arg13[%c0_57, %c0_58] : memref<1x128xf32, #tpu.memory_space<vmem>>, vector<1x128xf32>
    %132 = vector.broadcast %131 : vector<1x128xf32> to vector<16x128xf32>
    %133 = arith.addf %130, %132 : vector<16x128xf32>
    %c0_59 = arith.constant 0 : index
    %c0_60 = arith.constant 0 : index
    %c0_61 = arith.constant 0 : index
    %134 = vector.load %arg14[%c0_59, %c0_60, %c0_61] : memref<1x16x128xf32, #tpu.memory_space<vmem>>, vector<1x16x128xf32>
    %135 = vector.shape_cast %134 : vector<1x16x128xf32> to vector<16x128xf32>
    %136 = vector.shape_cast %133 : vector<16x128xf32> to vector<1x16x128xf32>
    tpu.vector_store %arg14[%c0_59, %c0_60, %c0_61], %136 {strides = array<i32>} : memref<1x16x128xf32, #tpu.memory_space<vmem>>, vector<1x16x128xf32>,
    return
  }
  func.func @transform_0(%arg0: i32) -> (i32, i32, i32) {
    %c0_i32 = arith.constant 0 : i32
    %c0_i32_0 = arith.constant 0 : i32
    %c0_i32_1 = arith.constant 0 : i32
    return %arg0, %c0_i32, %c0_i32_0 : i32, i32, i32
  }
  func.func @transform_1(%arg0: i32) -> (i32, i32, i32) {
    %c0_i32 = arith.constant 0 : i32
    %c0_i32_0 = arith.constant 0 : i32
    %c0_i32_1 = arith.constant 0 : i32
    %c0_i32_2 = arith.constant 0 : i32
    return %c0_i32, %c0_i32_0, %c0_i32_1 : i32, i32, i32
  }
  func.func @transform_2(%arg0: i32) -> (i32, i32) {
    %c0_i32 = arith.constant 0 : i32
    %c0_i32_0 = arith.constant 0 : i32
    %c0_i32_1 = arith.constant 0 : i32
    return %c0_i32, %c0_i32_0 : i32, i32
  }
  func.func @transform_3(%arg0: i32) -> (i32, i32) {
    %c0_i32 = arith.constant 0 : i32
    %c0_i32_0 = arith.constant 0 : i32
    %c0_i32_1 = arith.constant 0 : i32
    return %c0_i32, %c0_i32_0 : i32, i32
  }
  func.func @transform_4(%arg0: i32) -> (i32, i32) {
    %c0_i32 = arith.constant 0 : i32
    %c0_i32_0 = arith.constant 0 : i32
    %c0_i32_1 = arith.constant 0 : i32
    return %c0_i32, %c0_i32_0 : i32, i32
  }
  func.func @transform_5(%arg0: i32) -> (i32, i32) {
    %c0_i32 = arith.constant 0 : i32
    %c0_i32_0 = arith.constant 0 : i32
    %c0_i32_1 = arith.constant 0 : i32
    return %c0_i32, %c0_i32_0 : i32, i32
  }
  func.func @transform_6(%arg0: i32) -> (i32, i32) {
    %c0_i32 = arith.constant 0 : i32
    %c0_i32_0 = arith.constant 0 : i32
    %c0_i32_1 = arith.constant 0 : i32
    return %c0_i32, %c0_i32_0 : i32, i32
  }
  func.func @transform_7(%arg0: i32) -> (i32, i32) {
    %c0_i32 = arith.constant 0 : i32
    %c0_i32_0 = arith.constant 0 : i32
    %c0_i32_1 = arith.constant 0 : i32
    return %c0_i32, %c0_i32_0 : i32, i32
  }
  func.func @transform_8(%arg0: i32) -> (i32, i32) {
    %c0_i32 = arith.constant 0 : i32
    %c0_i32_0 = arith.constant 0 : i32
    %c0_i32_1 = arith.constant 0 : i32
    return %c0_i32, %c0_i32_0 : i32, i32
  }
  func.func @transform_9(%arg0: i32) -> (i32, i32) {
    %c0_i32 = arith.constant 0 : i32
    %c0_i32_0 = arith.constant 0 : i32
    %c0_i32_1 = arith.constant 0 : i32
    return %c0_i32, %c0_i32_0 : i32, i32
  }
  func.func @transform_10(%arg0: i32) -> (i32, i32) {
    %c0_i32 = arith.constant 0 : i32
    %c0_i32_0 = arith.constant 0 : i32
    %c0_i32_1 = arith.constant 0 : i32
    return %c0_i32, %c0_i32_0 : i32, i32
  }
  func.func @transform_11(%arg0: i32) -> (i32, i32) {
    %c0_i32 = arith.constant 0 : i32
    %c0_i32_0 = arith.constant 0 : i32
    %c0_i32_1 = arith.constant 0 : i32
    return %c0_i32, %c0_i32_0 : i32, i32
  }
  func.func @transform_12(%arg0: i32) -> (i32, i32) {
    %c0_i32 = arith.constant 0 : i32
    %c0_i32_0 = arith.constant 0 : i32
    %c0_i32_1 = arith.constant 0 : i32
    return %c0_i32, %c0_i32_0 : i32, i32
  }
  func.func @transform_13(%arg0: i32) -> (i32, i32, i32) {
    %c0_i32 = arith.constant 0 : i32
    %c0_i32_0 = arith.constant 0 : i32
    %c0_i32_1 = arith.constant 0 : i32
    return %arg0, %c0_i32, %c0_i32_0 : i32, i32, i32
  }
}

</mosaic_0001>

<bundles_post_ra>
// kernel: tile.52
= control target key start
LH: loop header
LB: loop body
LE: loop exit
PB: predicated region body
PF: predicated region fallthrough
CT: control target
= control target key end

     0   :  { %vm6_vm0 = vcmask 1043458   ;;  %s53_s10 = smov 3  ;;  %s56_s11 = smov 12  ;;  %vm10_vm1 = vcmask 1045508   ;;  %vm14_vm2 = vcmask 1047558   ;;  %vm16_vm3 = vcmask 64512   ;;  %s978_s0 = inlined_call_operand.vmem [shape: f32[9,16,1,1,8], index: 0, kind: input, shape index: {}]   ;;  %s979_s1 = inlined_call_operand.vmem [shape: f32[9,128], index: 1, kind: output, shape index: {}]  }
   0x1   :  { %v470_v0 = vld [vmem:[%s978_s0 + $0x8e] sm:$0x1]   ;;  %v464_v1 = vld [vmem:[%s978_s0 + $0x8f] sm:$0x1]   ;;  %s565_s12 = smov 112   ;;  %s566_s13 = smov 120  }
   0x2   :  { %76 = vrot.lane.b32.xlu1 %v470_v0, %s565_s12  ;;  %47 = vrot.lane.b32.xlu0 %v464_v1, %s566_s13  ;;  %v466_v2 = vld [vmem:[%s978_s0 + $0xe] ss:$16 sm:%s53_s10]   ;;  %s61_s16 = smov 48  ;;  %s66_s17 = smov 192  ;;  %vm43_vm4 = vcmask 1048512   ;;  %vm72_vm5 = vcmask 982912  }
   0x3   :  { %v467_v3 = vld [vmem:[%s978_s0 + $0xe] ss:$16 sm:%s56_s11]   ;;  %s24_s22 = smov 3  ;;  %s27_s23 = smov 12  ;;  %v476_v15 = vld [vmem:[%s978_s0 + $0x8d] sm:$0x1]  }
   0x4   :  { %v468_v4 = vld [vmem:[%s978_s0 + $0xe] ss:$16 sm:%s61_s16]   ;;  %v59_v5 = vsel %vm6_vm0, %v467_v3, %v466_v2  ;;  %v460_v7 = vld [vmem:[%s978_s0 + $0xf] ss:$16 sm:%s24_s22]   ;;  %s32_s28 = smov 48  ;;  %s37_s29 = smov 192 }
   0x5   :  { %v469_v6 = vld [vmem:[%s978_s0 + $0xe] ss:$16 sm:%s66_s17]   ;;  %v64_v8 = vsel %vm10_vm1, %v468_v4, %v59_v5  ;;  %v461_v9 = vld [vmem:[%s978_s0 + $0xf] ss:$16 sm:%s27_s23]   ;;  %s82_s5 = smov 3  ;;  %s85_s8 = smov 12 }
   0x6   :  { %v462_v10 = vld [vmem:[%s978_s0 + $0xf] ss:$16 sm:%s32_s28]   ;;  %v69_v11 = vsel %vm14_vm2, %v469_v6, %v64_v8  ;;  %v30_v12 = vsel %vm6_vm0, %v461_v9, %v460_v7  ;;  %s90_s9 = smov 48  ;;  %v472_v16 = vld [vmem:[%s978_s0 + $0xd] ss:$16 sm:%s82_s5]   ;;  %s95_s15 = smov 192 }
   0x7   :  { %v463_v13 = vld [vmem:[%s978_s0 + $0xf] ss:$16 sm:%s37_s29]   ;;  %70 = vrot.lane.b32.xlu1 %v69_v11, %s565_s12  ;;  %v35_v14 = vsel %vm10_vm1, %v462_v10, %v30_v12  ;;  %s111_s20 = smov 3  ;;  %s114_s21 = smov 12  ;;  %v482_v26 = vld [vmem:[%s978_s0 + $0x8c] sm:$0x1]  }
   0x8   :  { %v40_v17 = vsel %vm14_vm2, %v463_v13, %v35_v14  ;;  %v473_v18 = vld [vmem:[%s978_s0 + $0xd] ss:$16 sm:%s85_s8]   ;;  %s119_s23 = smov 48  ;;  %s124_s24 = smov 192  ;;  %v478_v23 = vld [vmem:[%s978_s0 + $0xc] ss:$16 sm:%s111_s20]  }
   0x9   :  { %v474_v19 = vld [vmem:[%s978_s0 + $0xd] ss:$16 sm:%s90_s9]   ;;  %41 = vrot.lane.b32.xlu0 %v40_v17, %s566_s13  ;;  %v88_v20 = vsel %vm6_vm0, %v473_v18, %v472_v16  ;;  %s140_s29 = smov 3  ;;  %s567_s30 = smov 104   ;;  %v488_v37 = vld [vmem:[%s978_s0 + $0x8b] sm:$0x1]  }
   0xa   :  { %v475_v21 = vld [vmem:[%s978_s0 + $0xd] ss:$16 sm:%s95_s15]   ;;  %v93_v22 = vsel %vm10_vm1, %v474_v19, %v88_v20  ;;  %v479_v24 = vld [vmem:[%s978_s0 + $0xc] ss:$16 sm:%s114_s21]   ;;  %s143_s6 = smov 12  ;;  %s148_s7 = smov 48 }
   0xb   :  { %105 = vrot.lane.b32.xlu1 %v476_v15, %s567_s30  ;;  %v98_v25 = vsel %vm14_vm2, %v475_v21, %v93_v22  ;;  %v117_v27 = vsel %vm6_vm0, %v479_v24, %v478_v23  ;;  %v480_v28 = vld [vmem:[%s978_s0 + $0xc] ss:$16 sm:%s119_s23]   ;;  %s153_s12 = smov 192  ;;  %s169_s16 = smov 3  ;;  %v494_v46 = vld [vmem:[%s978_s0 + $0x8a] sm:$0x1]  }
   0xc   :  { %v122_v29 = vsel %vm10_vm1, %v480_v28, %v117_v27  ;;  %v481_v30 = vld [vmem:[%s978_s0 + $0xc] ss:$16 sm:%s124_s24]   ;;  %v484_v31 = vld [vmem:[%s978_s0 + $0xb] ss:$16 sm:%s140_s29]   ;;  %s172_s17 = smov 12  ;;  %s177_s13 = smov 48 }
   0xd   :  { %99 = vrot.lane.b32.xlu0 %v98_v25, %s567_s30  ;;  %v485_v32 = vld [vmem:[%s978_s0 + $0xb] ss:$16 sm:%s143_s6]   ;;  %v127_v33 = vsel %vm14_vm2, %v481_v30, %v122_v29  ;;  %s568_s22 = smov 96   ;;  %s198_s27 = smov 3  ;;  %v500_v54 = vld [vmem:[%s978_s0 + $0x89] sm:$0x1]  }
   0xe   :  { %v146_v34 = vsel %vm6_vm0, %v485_v32, %v484_v31  ;;  %v486_v35 = vld [vmem:[%s978_s0 + $0xb] ss:$16 sm:%s148_s7]   ;;  %v490_v39 = vld [vmem:[%s978_s0 + $0xa] ss:$16 sm:%s169_s16]   ;;  %s182_s3 = smov 192  ;;  %s201_s4 = smov 12 }
   0xf   :  { %v487_v36 = vld [vmem:[%s978_s0 + $0xb] ss:$16 sm:%s153_s12]   ;;  %134 = vrot.lane.b32.xlu1 %v482_v26, %s568_s22  ;;  %v151_v38 = vsel %vm10_vm1, %v486_v35, %v146_v34  ;;  %s206_s5 = smov 48  ;;  %s227_s10 = smov 3  ;;  %v506_v62 = vld [vmem:[%s978_s0 + $0x88] sm:$0x1]  }
  0x10   :  { %v491_v40 = vld [vmem:[%s978_s0 + $0xa] ss:$16 sm:%s172_s17]   ;;  %v156_v43 = vsel %vm14_vm2, %v487_v36, %v151_v38  ;;  %v496_v44 = vld [vmem:[%s978_s0 + $0x9] ss:$16 sm:%s198_s27]   ;;  %s230_s11 = smov 12  ;;  %s569_s12 = smov 88  }
  0x11   :  { %v492_v41 = vld [vmem:[%s978_s0 + $0xa] ss:$16 sm:%s177_s13]   ;;  %128 = vrot.lane.b32.xlu0 %v127_v33, %s568_s22  ;;  %v175_v42 = vsel %vm6_vm0, %v491_v40, %v490_v39  ;;  %s211_s20 = smov 192  ;;  %s235_s24 = smov 48  ;;  %v512_v6 = vld [vmem:[%s978_s0 + $0x87] sm:$0x1]  }
  0x12   :  { %v497_v45 = vld [vmem:[%s978_s0 + $0x9] ss:$16 sm:%s201_s4]   ;;  %v180_v47 = vsel %vm10_vm1, %v492_v41, %v175_v42  ;;  %v493_v48 = vld [vmem:[%s978_s0 + $0xa] ss:$16 sm:%s182_s3]   ;;  %s256_s25 = smov 3  ;;  %s259_s26 = smov 12 }
  0x13   :  { %163 = vrot.lane.b32.xlu1 %v488_v37, %s569_s12  ;;  %v204_v49 = vsel %vm6_vm0, %v497_v45, %v496_v44  ;;  %v498_v50 = vld [vmem:[%s978_s0 + $0x9] ss:$16 sm:%s206_s5]   ;;  %v185_v53 = vsel %vm14_vm2, %v493_v48, %v180_v47  ;;  %s570_s27 = smov 80   ;;  %s240_s5 = smov 192  ;;  %v458_v9 = vld [vmem:[%s978_s0 + $0x80] sm:$0x1]  }
  0x14   :  { %v502_v51 = vld [vmem:[%s978_s0 + $0x8] ss:$16 sm:%s227_s10]   ;;  %v209_v55 = vsel %vm10_vm1, %v498_v50, %v204_v49  ;;  %v499_v56 = vld [vmem:[%s978_s0 + $0x9] ss:$16 sm:%s211_s20]   ;;  %s264_s10 = smov 48  ;;  %s571_s14 = smov 72  }
  0x15   :  { %157 = vrot.lane.b32.xlu0 %v156_v43, %s569_s12  ;;  %v503_v52 = vld [vmem:[%s978_s0 + $0x8] ss:$16 sm:%s230_s11]   ;;  %s285_s11 = smov 3  ;;  %v214_v61 = vsel %vm14_vm2, %v499_v56, %v209_v55  ;;  %s288_s12 = smov 12  ;;  %459 = vst.msk [vmem:[%s979_s1 + $0x8] sm:$0x1] %vm16_vm3, %v458_v9  }
  0x16   :  { %v233_v57 = vsel %vm6_vm0, %v503_v52, %v502_v51  ;;  %v504_v58 = vld [vmem:[%s978_s0 + $0x8] ss:$16 sm:%s235_s24]   ;;  %v508_v59 = vld [vmem:[%s978_s0 + $0x7] ss:$16 sm:%s256_s25]   ;;  %s269_s21 = smov 192  ;;  %s293_s25 = smov 48 }
  0x17   :  { %192 = vrot.lane.b32.xlu1 %v494_v46, %s570_s27  ;;  %v509_v60 = vld [vmem:[%s978_s0 + $0x7] ss:$16 sm:%s259_s26]   ;;  %v238_v63 = vsel %vm10_vm1, %v504_v58, %v233_v57  ;;  %s314_s26 = smov 3  ;;  %s317_s29 = smov 12  ;;  %v518_v15 = vld [vmem:[%s978_s0 + $0x86] sm:$0x1]  }
  0x18   :  { %v505_v0 = vld [vmem:[%s978_s0 + $0x8] ss:$16 sm:%s240_s5]   ;;  %v262_v1 = vsel %vm6_vm0, %v509_v60, %v508_v59  ;;  %v510_v2 = vld [vmem:[%s978_s0 + $0x7] ss:$16 sm:%s264_s10]   ;;  %s572_s30 = smov 64   ;;  %s298_s8 = smov 192 }
  0x19   :  { %186 = vrot.lane.b32.xlu0 %v185_v53, %s570_s27  ;;  %v514_v3 = vld [vmem:[%s978_s0 + $0x6] ss:$16 sm:%s285_s11]   ;;  %v243_v5 = vsel %vm14_vm2, %v505_v0, %v238_v63  ;;  %v267_v7 = vsel %vm10_vm1, %v510_v2, %v262_v1  ;;  %s322_s16 = smov 48  ;;  %s343_s17 = smov 3  ;;  %v524_v23 = vld [vmem:[%s978_s0 + $0x85] sm:$0x1]  }
  0x1a   :  { %v515_v4 = vld [vmem:[%s978_s0 + $0x6] ss:$16 sm:%s288_s12]   ;;  %v511_v8 = vld [vmem:[%s978_s0 + $0x7] ss:$16 sm:%s269_s21]   ;;  %s346_s18 = smov 12  ;;  %s573_s19 = smov 56  }
  0x1b   :  { %221 = vrot.lane.b32.xlu1 %v500_v54, %s571_s14  ;;  %v291_v10 = vsel %vm6_vm0, %v515_v4, %v514_v3  ;;  %v516_v11 = vld [vmem:[%s978_s0 + $0x6] ss:$16 sm:%s293_s25]   ;;  %v272_v14 = vsel %vm14_vm2, %v511_v8, %v267_v7  ;;  %s327_s25 = smov 192  ;;  %s351_s28 = smov 48  ;;  %v530_v35 = vld [vmem:[%s978_s0 + $0x84] sm:$0x1]  }
  0x1c   :  { %v520_v12 = vld [vmem:[%s978_s0 + $0x5] ss:$16 sm:%s314_s26]   ;;  %v296_v16 = vsel %vm10_vm1, %v516_v11, %v291_v10  ;;  %v517_v17 = vld [vmem:[%s978_s0 + $0x6] ss:$16 sm:%s298_s8]   ;;  %s356_s2 = smov 192  ;;  %s372_s3 = smov 3 }
  0x1d   :  { %215 = vrot.lane.b32.xlu0 %v214_v61, %s571_s14  ;;  %v521_v13 = vld [vmem:[%s978_s0 + $0x5] ss:$16 sm:%s317_s29]   ;;  %v301_v22 = vsel %vm14_vm2, %v517_v17, %v296_v16  ;;  %s375_s4 = smov 12  ;;  %s380_s5 = smov 48  ;;  %v536_v46 = vld [vmem:[%s978_s0 + $0x83] sm:$0x1]  }
  0x1e   :  { %v320_v18 = vsel %vm6_vm0, %v521_v13, %v520_v12  ;;  %v522_v19 = vld [vmem:[%s978_s0 + $0x5] ss:$16 sm:%s322_s16]   ;;  %v526_v20 = vld [vmem:[%s978_s0 + $0x4] ss:$16 sm:%s343_s17]   ;;  %s574_s6 = smov 48   ;;  %s2_s11 = smov 3 }
  0x1f   :  { %250 = vrot.lane.b32.xlu1 %v506_v62, %s572_s30  ;;  %v527_v21 = vld [vmem:[%s978_s0 + $0x4] ss:$16 sm:%s346_s18]   ;;  %v325_v24 = vsel %vm10_vm1, %v522_v19, %v320_v18  ;;  %s4_s12 = smov 12  ;;  %s8_s18 = smov 48  ;;  %v542_v56 = vld [vmem:[%s978_s0 + $0x82] sm:$0x1]  }
  0x20   :  { %v523_v25 = vld [vmem:[%s978_s0 + $0x5] ss:$16 sm:%s327_s25]   ;;  %v349_v26 = vsel %vm6_vm0, %v527_v21, %v526_v20  ;;  %v528_v27 = vld [vmem:[%s978_s0 + $0x4] ss:$16 sm:%s351_s28]   ;;  %s401_s22 = smov 3  ;;  %s12_s23 = smov 192 }
  0x21   :  { %244 = vrot.lane.b32.xlu0 %v243_v5, %s572_s30  ;;  %v532_v28 = vld [vmem:[%s978_s0 + $0x3] ss:$16 sm:%s372_s3]   ;;  %v330_v31 = vsel %vm14_vm2, %v523_v25, %v325_v24  ;;  %s404_s26 = smov 12  ;;  %v354_v36 = vsel %vm10_vm1, %v528_v27, %v349_v26  ;;  %s385_s7 = smov 192  ;;  %v548_v62 = vld [vmem:[%s978_s0 + $0x81] sm:$0x1]  }
  0x22   :  { %v529_v29 = vld [vmem:[%s978_s0 + $0x4] ss:$16 sm:%s356_s2]   ;;  %v533_v30 = vld [vmem:[%s978_s0 + $0x3] ss:$16 sm:%s375_s4]   ;;  %s575_s2 = smov 40   ;;  %s409_s15 = smov 48 }
  0x23   :  { %279 = vrot.lane.b32.xlu1 %v512_v6, %s573_s19  ;;  %v534_v32 = vld [vmem:[%s978_s0 + $0x3] ss:$16 sm:%s380_s5]   ;;  %v378_v39 = vsel %vm6_vm0, %v533_v30, %v532_v28  ;;  %s430_s16 = smov 3  ;;  %v359_v45 = vsel %vm14_vm2, %v529_v29, %v354_v36  ;;  %s433_s17 = smov 12  ;;  %vm101_vm6 = vcmask 917312   ;;  %vm130_vm7 = vcmask 851712  }
  0x24   :  { %v3_v33 = vld [vmem:[%s978_s0] ss:$16 sm:%s2_s11]   ;;  %v538_v40 = vld [vmem:[%s978_s0 + $0x2] ss:$16 sm:%s401_s22]   ;;  %s576_s20 = smov 32   ;;  %v383_v47 = vsel %vm10_vm1, %v534_v32, %v378_v39  ;;  %s577_s3 = smov 24  }
  0x25   :  { %273 = vrot.lane.b32.xlu0 %v272_v14, %s573_s19  ;;  %v5_v34 = vld [vmem:[%s978_s0] ss:$16 sm:%s4_s12]   ;;  %s443_s10 = smov 192  ;;  %s578_s11 = smov 16   ;;  %vm159_vm8 = vcmask 786112   ;;  %vm188_vm9 = vcmask 720512  }
  0x26   :  { %v7_v37 = vsel %vm6_vm0, %v5_v34, %v3_v33  ;;  %v9_v38 = vld [vmem:[%s978_s0] ss:$16 sm:%s8_s18]   ;;  %v539_v43 = vld [vmem:[%s978_s0 + $0x2] ss:$16 sm:%s404_s26]   ;;  %s414_s26 = smov 192  ;;  %vm217_vm10 = vcmask 654912  }
  0x27   :  { %308 = vrot.lane.b32.xlu1 %v518_v15, %s574_s6  ;;  %v11_v41 = vsel %vm10_vm1, %v9_v38, %v7_v37  ;;  %v13_v42 = vld [vmem:[%s978_s0] ss:$16 sm:%s12_s23]   ;;  %v407_v49 = vsel %vm6_vm0, %v539_v43, %v538_v40  ;;  %vm246_vm11 = vcmask 589312   ;;  %vm275_vm12 = vcmask 523712  }
  0x28   :  { %v15_v44 = vsel %vm14_vm2, %v13_v42, %v11_v41  ;;  %v535_v48 = vld [vmem:[%s978_s0 + $0x3] ss:$16 sm:%s385_s7]   ;;  %v540_v50 = vld [vmem:[%s978_s0 + $0x2] ss:$16 sm:%s409_s15]   ;;  %vm304_vm13 = vcmask 458112   ;;  %vm333_vm14 = vcmask 392512  }
  0x29   :  { %302 = vrot.lane.b32.xlu0 %v301_v22, %s574_s6  ;;  %17 = vst.msk [vmem:[%s979_s1] sm:$0xff] %vm16_vm3, %v15_v44   ;;  %v544_v51 = vld [vmem:[%s978_s0 + $0x1] ss:$16 sm:%s430_s16]   ;;  %v388_v53 = vsel %vm14_vm2, %v535_v48, %v383_v47  ;;  %v412_v54 = vsel %vm10_vm1, %v540_v50, %v407_v49  ;;  %vm362_vm15 = vcmask 326912  }
  0x2a   :  { %v545_v52 = vld [vmem:[%s978_s0 + $0x1] ss:$16 sm:%s433_s17]   ;;  %v541_v55 = vld [vmem:[%s978_s0 + $0x2] ss:$16 sm:%s414_s26]  }
  0x2b   :  { %337 = vrot.lane.b32.xlu1 %v524_v23, %s575_s2  ;;  %v436_v57 = vsel %vm6_vm0, %v545_v52, %v544_v51  ;;  %v417_v59 = vsel %vm14_vm2, %v541_v55, %v412_v54  ;;  %v547_v61 = vld [vmem:[%s978_s0 + $0x1] ss:$16 sm:%s443_s10]   ;;  %vm391_vm0 = vcmask 261312  }
  0x2d   :  { %331 = vrot.lane.b32.xlu0 %v330_v31, %s575_s2  ;;  %s438_s2 = smov 48 }
  0x2e   :  { %v546_v58 = vld [vmem:[%s978_s0 + $0x1] ss:$16 sm:%s438_s2]   ;;  %s579_s0 = smov 8  }
  0x2f   :  { %366 = vrot.lane.b32.xlu1 %v530_v35, %s576_s20  ;;  %v441_v60 = vsel %vm10_vm1, %v546_v58, %v436_v57  ;;  %vm420_vm1 = vcmask 195712  }
  0x30   :  { %v446_v63 = vsel %vm14_vm2, %v547_v61, %v441_v60  ;;  %vm449_vm2 = vcmask 130112  }
  0x31   :  { %360 = vrot.lane.b32.xlu0 %v359_v45, %s576_s20 }
  0x33   :  { %395 = vrot.lane.b32.xlu1 %v536_v46, %s577_s3 }
  0x35   :  { %389 = vrot.lane.b32.xlu0 %v388_v53, %s577_s3 }
  0x37   :  { %424 = vrot.lane.b32.xlu1 %v542_v56, %s578_s11 }
  0x39   :  { %418 = vrot.lane.b32.xlu0 %v417_v59, %s578_s11 }
  0x3b   :  { %453 = vrot.lane.b32.xlu1 %v548_v62, %s579_s0 }
  0x3d   :  { %447 = vrot.lane.b32.xlu0 %v446_v63, %s579_s0 }
  0x74   :  { %v77_v0 = vpop.permute.xlu1 %76   ;;  %v48_v1 = vpop.permute.xlu0 %47  }
  0x75   :  { %465 = vst.msk [vmem:[%s979_s1 + $0x8] sm:$0x1] %vm43_vm4, %v48_v1  }
  0x76   :  { %471 = vst.msk [vmem:[%s979_s1 + $0x8] sm:$0x1] %vm72_vm5, %v77_v0  }
  0x79   :  { %v71_v2 = vpop.permute.xlu1 %70  }
  0x7b   :  { %v42_v3 = vpop.permute.xlu0 %41  }
  0x7c   :  { %44 = vst.msk [vmem:[%s979_s1] sm:$0xff] %vm43_vm4, %v42_v3  }
  0x7d   :  { %73 = vst.msk [vmem:[%s979_s1] sm:$0xff] %vm72_vm5, %v71_v2   ;;  %v106_v4 = vpop.permute.xlu1 %105  }
  0x7e   :  { %477 = vst.msk [vmem:[%s979_s1 + $0x8] sm:$0x1] %vm101_vm6, %v106_v4  }
  0x7f   :  { %v100_v5 = vpop.permute.xlu0 %99  }
  0x80   :  { %102 = vst.msk [vmem:[%s979_s1] sm:$0xff] %vm101_vm6, %v100_v5  }
  0x81   :  { %v135_v6 = vpop.permute.xlu1 %134  }
  0x82   :  { %483 = vst.msk [vmem:[%s979_s1 + $0x8] sm:$0x1] %vm130_vm7, %v135_v6  }
  0x83   :  { %v129_v7 = vpop.permute.xlu0 %128  }
  0x84   :  { %131 = vst.msk [vmem:[%s979_s1] sm:$0xff] %vm130_vm7, %v129_v7  }
  0x85   :  { %v164_v8 = vpop.permute.xlu1 %163  }
  0x86   :  { %489 = vst.msk [vmem:[%s979_s1 + $0x8] sm:$0x1] %vm159_vm8, %v164_v8  }
  0x87   :  { %v158_v9 = vpop.permute.xlu0 %157  }
  0x88   :  { %160 = vst.msk [vmem:[%s979_s1] sm:$0xff] %vm159_vm8, %v158_v9  }
  0x89   :  { %v193_v10 = vpop.permute.xlu1 %192  }
  0x8a   :  { %495 = vst.msk [vmem:[%s979_s1 + $0x8] sm:$0x1] %vm188_vm9, %v193_v10  }
  0x8b   :  { %v187_v11 = vpop.permute.xlu0 %186  }
  0x8c   :  { %189 = vst.msk [vmem:[%s979_s1] sm:$0xff] %vm188_vm9, %v187_v11  }
  0x8d   :  { %v222_v12 = vpop.permute.xlu1 %221  }
  0x8e   :  { %501 = vst.msk [vmem:[%s979_s1 + $0x8] sm:$0x1] %vm217_vm10, %v222_v12  }
  0x8f   :  { %v216_v13 = vpop.permute.xlu0 %215  }
  0x90   :  { %218 = vst.msk [vmem:[%s979_s1] sm:$0xff] %vm217_vm10, %v216_v13  }
  0x91   :  { %v251_v14 = vpop.permute.xlu1 %250  }
  0x92   :  { %507 = vst.msk [vmem:[%s979_s1 + $0x8] sm:$0x1] %vm246_vm11, %v251_v14  }
  0x93   :  { %v245_v15 = vpop.permute.xlu0 %244  }
  0x94   :  { %247 = vst.msk [vmem:[%s979_s1] sm:$0xff] %vm246_vm11, %v245_v15  }
  0x95   :  { %v280_v16 = vpop.permute.xlu1 %279  }
  0x96   :  { %513 = vst.msk [vmem:[%s979_s1 + $0x8] sm:$0x1] %vm275_vm12, %v280_v16  }
  0x97   :  { %v274_v17 = vpop.permute.xlu0 %273  }
  0x98   :  { %276 = vst.msk [vmem:[%s979_s1] sm:$0xff] %vm275_vm12, %v274_v17  }
  0x99   :  { %v309_v18 = vpop.permute.xlu1 %308  }
  0x9a   :  { %519 = vst.msk [vmem:[%s979_s1 + $0x8] sm:$0x1] %vm304_vm13, %v309_v18  }
  0x9b   :  { %v303_v19 = vpop.permute.xlu0 %302  }
  0x9c   :  { %305 = vst.msk [vmem:[%s979_s1] sm:$0xff] %vm304_vm13, %v303_v19  }
  0x9d   :  { %v338_v20 = vpop.permute.xlu1 %337  }
  0x9e   :  { %525 = vst.msk [vmem:[%s979_s1 + $0x8] sm:$0x1] %vm333_vm14, %v338_v20  }
  0x9f   :  { %v332_v21 = vpop.permute.xlu0 %331  }
  0xa0   :  { %334 = vst.msk [vmem:[%s979_s1] sm:$0xff] %vm333_vm14, %v332_v21  }
  0xa1   :  { %v367_v22 = vpop.permute.xlu1 %366  }
  0xa2   :  { %531 = vst.msk [vmem:[%s979_s1 + $0x8] sm:$0x1] %vm362_vm15, %v367_v22  }
  0xa3   :  { %v361_v23 = vpop.permute.xlu0 %360  }
  0xa4   :  { %363 = vst.msk [vmem:[%s979_s1] sm:$0xff] %vm362_vm15, %v361_v23  }
  0xa5   :  { %v396_v24 = vpop.permute.xlu1 %395  }
  0xa6   :  { %537 = vst.msk [vmem:[%s979_s1 + $0x8] sm:$0x1] %vm391_vm0, %v396_v24  }
  0xa7   :  { %v390_v25 = vpop.permute.xlu0 %389  }
  0xa8   :  { %392 = vst.msk [vmem:[%s979_s1] sm:$0xff] %vm391_vm0, %v390_v25  }
  0xa9   :  { %v425_v26 = vpop.permute.xlu1 %424  }
  0xaa   :  { %543 = vst.msk [vmem:[%s979_s1 + $0x8] sm:$0x1] %vm420_vm1, %v425_v26  }
  0xab   :  { %v419_v27 = vpop.permute.xlu0 %418  }
  0xac   :  { %421 = vst.msk [vmem:[%s979_s1] sm:$0xff] %vm420_vm1, %v419_v27  }
  0xad   :  { %v454_v28 = vpop.permute.xlu1 %453  }
  0xae   :  { %549 = vst.msk [vmem:[%s979_s1 + $0x8] sm:$0x1] %vm449_vm2, %v454_v28  }
  0xaf   :  { %v448_v29 = vpop.permute.xlu0 %447  }
  0xb0   :  { %450 = vst.msk [vmem:[%s979_s1] sm:$0xff] %vm449_vm2, %v448_v29  }

// kernel: tile.56
= control target key start
LH: loop header
LB: loop body
LE: loop exit
PB: predicated region body
PF: predicated region fallthrough
CT: control target
= control target key end

     0   :  { %s28_s0 = inlined_call_operand.vmem [shape: f32[8], index: 0, kind: input, shape index: {}]   ;;  %s29_s1 = inlined_call_operand.vmem [shape: f32[16,8], index: 1, kind: output, shape index: {}]  }
   0x1   :  { %v4_v0 = vld [vmem:[%s28_s0] ss:$0 sm:$0xff] }
   0x2   :  { %5 = vst [vmem:[%s29_s1] sm:$0xff] %v4_v0  ;;  %8 = vst [vmem:[%s29_s1 + $0x8] sm:$0xff] %v4_v0 }

// kernel: tile.57
= control target key start
LH: loop header
LB: loop body
LE: loop exit
PB: predicated region body
PF: predicated region fallthrough
CT: control target
= control target key end

     0   :  { %s133_s10 = smov 120   ;;  %s134_s11 = smov 104   ;;  %vm3_vm0 = vcmask 64512   ;;  %vm9_vm1 = vcmask 1048512   ;;  %vm15_vm2 = vcmask 982912   ;;  %vm21_vm3 = vcmask 917312   ;;  %s209_s0 = inlined_call_operand.vmem [shape: f32[16,8], index: 0, kind: input, shape index: {}]   ;;  %s210_s1 = inlined_call_operand.vmem [shape: f32[1,128], index: 1, kind: output, shape index: {}]  }
   0x1   :  { %v103_v0 = vld [vmem:[%s209_s0 + $0xf] sm:$0x1]   ;;  %v105_v1 = vld [vmem:[%s209_s0 + $0xd] sm:$0x1]   ;;  %v104_v2 = vld [vmem:[%s209_s0 + $0xe] sm:$0x1]  }
   0x2   :  { %7 = vrot.lane.b32.xlu0 %v103_v0, %s133_s10  ;;  %19 = vrot.lane.b32.xlu1 %v105_v1, %s134_s11  ;;  %v106_v3 = vld [vmem:[%s209_s0 + $0xc] sm:$0x1]   ;;  %s135_s16 = smov 112   ;;  %s136_s17 = smov 96   ;;  %v107_v4 = vld [vmem:[%s209_s0 + $0xb] sm:$0x1]  }
   0x3   :  { %v108_v5 = vld [vmem:[%s209_s0 + $0xa] sm:$0x1]   ;;  %v2_v6 = vld [vmem:[%s209_s0] sm:$0x1]   ;;  %s137_s24 = smov 88   ;;  %s138_s25 = smov 80  }
   0x4   :  { %4 = vst.msk [vmem:[#allocation0] sm:$0x1] %vm3_vm0, %v2_v6   ;;  %v109_v7 = vld [vmem:[%s209_s0 + $0x9] sm:$0x1]   ;;  %v110_v8 = vld [vmem:[%s209_s0 + $0x8] sm:$0x1]  }
   0x5   :  { %s139_s30 = smov 72   ;;  %s140_s2 = smov 64   ;;  %v111_v9 = vld [vmem:[%s209_s0 + $0x7] sm:$0x1]   ;;  %v112_v10 = vld [vmem:[%s209_s0 + $0x6] sm:$0x1]  }
   0x6   :  { %13 = vrot.lane.b32.xlu0 %v104_v2, %s135_s16  ;;  %25 = vrot.lane.b32.xlu1 %v106_v3, %s136_s17  ;;  %s141_s7 = smov 56   ;;  %s142_s8 = smov 48   ;;  %v113_v11 = vld [vmem:[%s209_s0 + $0x5] sm:$0x1]   ;;  %v114_v12 = vld [vmem:[%s209_s0 + $0x4] sm:$0x1]  }
   0x7   :  { %s143_s13 = smov 40   ;;  %s144_s14 = smov 32   ;;  %v115_v13 = vld [vmem:[%s209_s0 + $0x3] sm:$0x1]   ;;  %v116_v14 = vld [vmem:[%s209_s0 + $0x2] sm:$0x1]  }
   0x8   :  { %s145_s19 = smov 24   ;;  %s146_s20 = smov 16   ;;  %v117_v15 = vld [vmem:[%s209_s0 + $0x1] sm:$0x1]   ;;  %vm27_vm4 = vcmask 851712   ;;  %vm33_vm5 = vcmask 786112  }
   0x9   :  { %s147_s0 = smov 8   ;;  %vm39_vm6 = vcmask 720512   ;;  %vm45_vm7 = vcmask 654912   ;;  %vm51_vm8 = vcmask 589312   ;;  %vm57_vm9 = vcmask 523712  }
   0xa   :  { %31 = vrot.lane.b32.xlu0 %v107_v4, %s137_s24  ;;  %37 = vrot.lane.b32.xlu1 %v108_v5, %s138_s25  ;;  %vm63_vm10 = vcmask 458112   ;;  %vm69_vm11 = vcmask 392512   ;;  %vm75_vm12 = vcmask 326912   ;;  %vm81_vm13 = vcmask 261312  }
   0xb   :  { %vm87_vm14 = vcmask 195712   ;;  %vm93_vm15 = vcmask 130112  }
   0xe   :  { %43 = vrot.lane.b32.xlu0 %v109_v7, %s139_s30  ;;  %49 = vrot.lane.b32.xlu1 %v110_v8, %s140_s2 }
  0x12   :  { %55 = vrot.lane.b32.xlu0 %v111_v9, %s141_s7  ;;  %61 = vrot.lane.b32.xlu1 %v112_v10, %s142_s8 }
  0x16   :  { %67 = vrot.lane.b32.xlu0 %v113_v11, %s143_s13  ;;  %73 = vrot.lane.b32.xlu1 %v114_v12, %s144_s14 }
  0x1a   :  { %79 = vrot.lane.b32.xlu0 %v115_v13, %s145_s19  ;;  %85 = vrot.lane.b32.xlu1 %v116_v14, %s146_s20 }
  0x1e   :  { %91 = vrot.lane.b32.xlu0 %v117_v15, %s147_s0 }
  0x74   :  { %v8_v16 = vpop.permute.xlu0 %7   ;;  %v20_v17 = vpop.permute.xlu1 %19  }
  0x75   :  { %10 = vst.msk [vmem:[#allocation0] sm:$0x1] %vm9_vm1, %v8_v16  }
  0x78   :  { %v14_v18 = vpop.permute.xlu0 %13   ;;  %v26_v19 = vpop.permute.xlu1 %25  }
  0x79   :  { %16 = vst.msk [vmem:[#allocation0] sm:$0x1] %vm15_vm2, %v14_v18  }
  0x7a   :  { %22 = vst.msk [vmem:[#allocation0] sm:$0x1] %vm21_vm3, %v20_v17  }
  0x7b   :  { %28 = vst.msk [vmem:[#allocation0] sm:$0x1] %vm27_vm4, %v26_v19  }
  0x7c   :  { %v32_v20 = vpop.permute.xlu0 %31   ;;  %v38_v21 = vpop.permute.xlu1 %37  }
  0x7d   :  { %34 = vst.msk [vmem:[#allocation0] sm:$0x1] %vm33_vm5, %v32_v20  }
  0x7e   :  { %40 = vst.msk [vmem:[#allocation0] sm:$0x1] %vm39_vm6, %v38_v21  }
  0x80   :  { %v44_v22 = vpop.permute.xlu0 %43   ;;  %v50_v23 = vpop.permute.xlu1 %49  }
  0x81   :  { %46 = vst.msk [vmem:[#allocation0] sm:$0x1] %vm45_vm7, %v44_v22  }
  0x82   :  { %52 = vst.msk [vmem:[#allocation0] sm:$0x1] %vm51_vm8, %v50_v23  }
  0x84   :  { %v56_v24 = vpop.permute.xlu0 %55   ;;  %v62_v25 = vpop.permute.xlu1 %61  }
  0x85   :  { %58 = vst.msk [vmem:[#allocation0] sm:$0x1] %vm57_vm9, %v56_v24  }
  0x86   :  { %64 = vst.msk [vmem:[#allocation0] sm:$0x1] %vm63_vm10, %v62_v25  }
  0x88   :  { %v68_v26 = vpop.permute.xlu0 %67   ;;  %v74_v27 = vpop.permute.xlu1 %73  }
  0x89   :  { %70 = vst.msk [vmem:[#allocation0] sm:$0x1] %vm69_vm11, %v68_v26  }
  0x8a   :  { %76 = vst.msk [vmem:[#allocation0] sm:$0x1] %vm75_vm12, %v74_v27  }
  0x8c   :  { %v80_v28 = vpop.permute.xlu0 %79   ;;  %v86_v29 = vpop.permute.xlu1 %85  }
  0x8d   :  { %82 = vst.msk [vmem:[#allocation0] sm:$0x1] %vm81_vm13, %v80_v28  }
  0x8e   :  { %88 = vst.msk [vmem:[#allocation0] sm:$0x1] %vm87_vm14, %v86_v29  }
  0x90   :  { %v92_v30 = vpop.permute.xlu0 %91  }
  0x91   :  { %94 = vst.msk [vmem:[#allocation0] sm:$0x1] %vm93_vm15, %v92_v30  }
  0x98   :  { %v99_v31 = vld [vmem:[#allocation0] sm:$0x1] }
  0x99   :  { %102 = vst [vmem:[%s210_s1] sm:$0x1] %v99_v31 }

// kernel: mc_forward.1
= control target key start
LH: loop header
LB: loop body
LE: loop exit
PB: predicated region body
PF: predicated region fallthrough
CT: control target
= control target key end

     0   :  { %s1391_s25 = smov 0   ;;  %s1698_s0 = inlined_call_operand.vmem [shape: f32[2,18,72], index: 0, kind: input, shape index: {}]   ;;  %s1699_s1 = inlined_call_operand.vmem [shape: f32[3,72,128], index: 1, kind: input, shape index: {}]   ;;  %s1700_s2 = inlined_call_operand.vmem [shape: f32[1,128], index: 2, kind: input, shape index: {}]   ;;  %s1701_s3 = inlined_call_operand.vmem [shape: f32[1,128], index: 3, kind: input, shape index: {}]   ;;  %s1702_s4 = inlined_call_operand.vmem [shape: f32[1,128], index: 4, kind: input, shape index: {}]   ;;  %s1703_s5 = inlined_call_operand.vmem [shape: f32[9,128], index: 5, kind: input, shape index: {}]   ;;  %s1704_s6 = inlined_call_operand.vmem [shape: f32[1,128], index: 6, kind: input, shape index: {}]   ;;  %s1705_s7 = inlined_call_operand.vmem [shape: f32[1,128], index: 7, kind: input, shape index: {}]   ;;  %s1706_s8 = inlined_call_operand.vmem [shape: f32[1,128], index: 8, kind: input, shape index: {}]   ;;  %s1707_s9 = inlined_call_operand.vmem [shape: f32[128,128], index: 9, kind: input, shape index: {}]   ;;  %s1708_s10 = inlined_call_operand.vmem [shape: f32[1,128], index: 10, kind: input, shape index: {}]   ;;  %s1709_s11 = inlined_call_operand.vmem [shape: f32[1,128], index: 11, kind: input, shape index: {}]   ;;  %s1710_s12 = inlined_call_operand.vmem [shape: f32[1,128], index: 12, kind: input, shape index: {}]   ;;  %s1711_s13 = inlined_call_operand.vmem [shape: f32[2,16,128], index: 13, kind: output, shape index: {}]  }
   0x1 LB: > { %s1106_s26 = sadd.s32 4294967295, %s1317_s25   ;;  %p1110_p0 = scmp.ge.s32.totalorder %s1317_s25, 1  ;;  %s1317_s25 = sphi %s1391_s25, %s23_s25  }
   0x2   : > { %p387_p1 = scmp.lt.s32.totalorder %s1317_s25, 3 }
   0x4   : > { %p388_p2 = pnand %p1110_p0, %p387_p1 }
   0x5   : > { %p431_p3 = scmp.lt.s32.totalorder (!%p388_p2), %s1106_s26, 1  ;;  %s1319_s20 = smov (!%p388_p2), 8  }
   0x6   : > { %391 = sbr.rel (%p388_p2) target bundleno = 613 (0x265), region = 72  ;;  %s1320_s27 = smov (!%p388_p2), 120  }
   0xb   : > { %v1122_v0 = vld [vmem:[%s1699_s1 + $0x88] sm:$0xff]  ;;  %v452_v1 = vld [vmem:[%s1699_s1 + $0x40] sm:$0xff]  ;;  %v451_v3 = vld [vmem:[%s1699_s1 + $0x38] sm:$0xff]  ;;  %s1715_s26 = smov (!%p431_p3, %s1106_s26), 1  ;;  %vm466_vm0 = vcmask 1046528   ;;  %vm472_vm1 = vcmask 588800   ;;  %v757_v56 = vlaneseq }
   0xc   : > { %v1121_v2 = vld [vmem:[%s1699_s1 + $0x80] sm:$0xff]  ;;  %1202 = vmatprep.subr.mxu0 %v1122_v0  ;;  %1223 = vmatprep.subr.mxu1 %v452_v1  ;;  %v1120_v4 = vld [vmem:[%s1699_s1 + $0x78] sm:$0xff]  ;;  %v450_v5 = vld [vmem:[%s1699_s1 + $0x30] sm:$0xff]  ;;  %s1300_s28 = smul.u32 24, %s1715_s26  ;;  %vm641_vm2 = vcmask 1045504  }
   0xd   : > { %1203 = vmatpush3.msra.mxu0 %v1122_v0  ;;  %1224 = vmatpush3.msra.mxu1 %v452_v1  ;;  %v1119_v6 = vld [vmem:[%s1699_s1 + $0x70] sm:$0xff]  ;;  %v449_v7 = vld [vmem:[%s1699_s1 + $0x28] sm:$0xff]  ;;  %v448_v9 = vld [vmem:[%s1699_s1 + $0x20] sm:$0xff]  ;;  %v1523_v63 = vshrl.u32 %v757_v56, 7 }
   0xe   : > { %1204 = vmatprep.subr.mxu0 %v1121_v2  ;;  %1225 = vmatprep.subr.mxu1 %v451_v3  ;;  %v1118_v8 = vld [vmem:[%s1699_s1 + $0x68] sm:$0xff]  ;;  %s435_s18 = scalar_lea.vmem %s1698_s0, %s1300_s28  ;;  %v1117_v10 = vld [vmem:[%s1699_s1 + $0x60] sm:$0xff]  ;;  %v447_v11 = vld [vmem:[%s1699_s1 + $0x18] sm:$0xff] }
   0xf   : > { %1205 = vmatpush3.msra.mxu0 %v1121_v2  ;;  %1226 = vmatpush3.msra.mxu1 %v451_v3  ;;  %v441_v12 = vld [vmem:[%s435_s18] sm:$0xff]  ;;  %v1441_v13 = vld [vmem:[%s435_s18 + $0x8] sm:$0xff]  ;;  %v1116_v14 = vld [vmem:[%s1699_s1 + $0x58] sm:$0xff]  ;;  %vm772_vm3 = vcmp.lt.s32.totalorder %v1523_v63, 1  ;;  %vm855_vm4 = vcmp.lt.s32.totalorder %v1523_v63, 7  ;;  %vm762_vm6 = vcmp.ge.s32.totalorder %v1523_v63, 1 }
  0x10   : > { %1206 = vmatprep.subr.mxu0 %v1120_v4  ;;  %1227 = vmatprep.subr.mxu1 %v450_v5  ;;  %v446_v15 = vld [vmem:[%s1699_s1 + $0x10] sm:$0xff]  ;;  %v467_v17 = vrot.slane %v441_v12, 1  ;;  %v468_v18 = vrot.slane %v1441_v13, 1  ;;  %v445_v20 = vld [vmem:[%s1699_s1 + $0x8] sm:$0xff]  ;;  %v444_v23 = vld [vmem:[%s1699_s1] sm:$0xff]  ;;  %v642_v24 = vrot.slane %v441_v12, 2 }
  0x11   : > { %1207 = vmatpush3.msra.mxu0 %v1120_v4  ;;  %1228 = vmatpush3.msra.mxu1 %v450_v5  ;;  %v1449_v16 = vld [vmem:[%s435_s18 + $0x10] sm:$0x3]  ;;  %v1114_v22 = vld [vmem:[%s1699_s1 + $0x48] sm:$0xff]  ;;  %v643_v25 = vrot.slane %v1441_v13, 2  ;;  %v1133_v31 = vld [vmem:[%s1699_s1 + $0xc0] sm:$0xff]  ;;  %s1150_s18 = sshll.u32 %s1715_s26, 4 }
  0x12   : > { %1208 = vmatprep.subr.mxu0 %v1119_v6  ;;  %1229 = vmatprep.subr.mxu1 %v449_v7  ;;  %v1115_v19 = vld [vmem:[%s1699_s1 + $0x50] sm:$0xff]  ;;  %v470_v21 = vrot.slane %v1449_v16, 1  ;;  %v469_v26 = vsel %vm466_vm0, %v467_v17, %v468_v18  ;;  %v1134_v30 = vld [vmem:[%s1699_s1 + $0xc8] sm:$0xff]  ;;  %v1132_v32 = vld [vmem:[%s1699_s1 + $0xb8] sm:$0xff]  ;;  %v645_v36 = vrot.slane %v1449_v16, 2  ;;  %s440_s23 = scalar_lea.vmem %s1711_s13, %s1150_s18 }
  0x13   : > { %1209 = vmatpush3.msra.mxu0 %v1119_v6  ;;  %1230 = vmatpush3.msra.mxu1 %v449_v7  ;;  %v1135_v28 = vld [vmem:[%s1699_s1 + $0xd0] sm:$0xff]  ;;  %v644_v29 = vsel %vm641_vm2, %v642_v24, %v643_v25  ;;  %v1130_v34 = vld [vmem:[%s1699_s1 + $0xa8] sm:$0xff]  ;;  %v1129_v35 = vld [vmem:[%s1699_s1 + $0xa0] sm:$0xff]  ;;  %v795_v24 = vsub.s32 1, %v1523_v63 }
  0x14   : > { %1210 = vmatprep.subr.mxu0 %v1118_v8  ;;  %1231 = vmatprep.subr.mxu1 %v448_v9  ;;  %v471_v27 = vsel %vm466_vm0, %v468_v18, %v470_v21  ;;  %v1131_v33 = vld [vmem:[%s1699_s1 + $0xb0] sm:$0xff]  ;;  %v1128_v37 = vld [vmem:[%s1699_s1 + $0x98] sm:$0xff]  ;;  %v646_v39 = vsel %vm641_vm2, %v643_v25, %v645_v36  ;;  %v1138_v46 = vld [vmem:[%s1700_s2] ss:$0 sm:$0xff]  ;;  %v785_v25 = vsub.s32 0, %v1523_v63 }
  0x15   : > { %1211 = vmatpush3.msra.mxu0 %v1118_v8  ;;  %1232 = vmatpush3.msra.mxu1 %v448_v9  ;;  %v1127_v38 = vld [vmem:[%s1699_s1 + $0x90] sm:$0xff]  ;;  %v1139_v52 = vld [vmem:[%s1701_s3] ss:$0 sm:$0xff]  ;;  %v946_v57 = vld [vmem:[%s1707_s9 + $0x78] sm:$0xff] }
  0x16   : > { %1212 = vmatprep.subr.mxu0 %v1117_v10  ;;  %1233 = vmatprep.subr.mxu1 %v447_v11  ;;  %v1140_v55 = vld [vmem:[%s1702_s4] ss:$0 sm:$0xff]  ;;  %v945_v60 = vld [vmem:[%s1707_s9 + $0x70] sm:$0xff]  ;;  %v944_v0 = vld [vmem:[%s1707_s9 + $0x68] sm:$0xff] }
  0x17   : > { %1213 = vmatpush3.msra.mxu0 %v1117_v10  ;;  %1234 = vmatpush3.msra.mxu1 %v447_v11  ;;  %v943_v2 = vld [vmem:[%s1707_s9 + $0x60] sm:$0xff]  ;;  %v942_v5 = vld [vmem:[%s1707_s9 + $0x58] sm:$0xff]  ;;  %v941_v7 = vld [vmem:[%s1707_s9 + $0x50] sm:$0xff] }
  0x18   : > { %1214 = vmatprep.subr.mxu0 %v1116_v14  ;;  %1235 = vmatprep.subr.mxu1 %v446_v15  ;;  %v940_v8 = vld [vmem:[%s1707_s9 + $0x48] sm:$0xff]  ;;  %v939_v10 = vld [vmem:[%s1707_s9 + $0x40] sm:$0xff] }
  0x19   : > { %1215 = vmatpush3.msra.mxu0 %v1116_v14  ;;  %1236 = vmatpush3.msra.mxu1 %v446_v15  ;;  %v937_v14 = vld [vmem:[%s1707_s9 + $0x30] sm:$0xff]  ;;  %v936_v16 = vld [vmem:[%s1707_s9 + $0x28] sm:$0xff]  ;;  %v935_v18 = vld [vmem:[%s1707_s9 + $0x20] sm:$0xff] }
  0x1a   : > { %1216 = vmatprep.subr.mxu0 %v1115_v19  ;;  %1237 = vmatprep.subr.mxu1 %v445_v20  ;;  %v932_v21 = vld [vmem:[%s1707_s9 + $0x8] sm:$0xff] }
  0x1b   : > { %1217 = vmatpush3.msra.mxu0 %v1115_v19  ;;  %1238 = vmatpush3.msra.mxu1 %v445_v20  ;;  %v934_v19 = vld [vmem:[%s1707_s9 + $0x18] sm:$0xff]  ;;  %v933_v20 = vld [vmem:[%s1707_s9 + $0x10] sm:$0xff] }
  0x1c   : > { %1218 = vmatprep.subr.mxu0 %v1114_v22  ;;  %1239 = vmatprep.subr.mxu1 %v444_v23 }
  0x1d   : > { %1219 = vmatpush3.msra.mxu0 %v1114_v22  ;;  %1220 = vmatprep.mubr.msk.f32.mxu0 %vm472_vm1, %v469_v26  ;;  %v931_v22 = vld [vmem:[%s1707_s9] sm:$0xff] }
  0x1e   : > { %1240 = vmatpush3.msra.mxu1 %v444_v23  ;;  %1241 = vmatprep.mubr.msk.f32.mxu1 %vm472_vm1, %v441_v12  ;;  %v938_v12 = vld [vmem:[%s1707_s9 + $0x38] sm:$0xff]  ;;  %v1612_v23 = vand.u32 127, %v757_v56 }
  0x1f   : > { %1221 = vmatmul.mubr.msk.f32.vlgmr.msra.gmra.mxu0 %vm472_vm1, %v471_v27  ;;  %1242 = vmatmul.mubr.msk.f32.vlgmr.msra.gmra.mxu1 %vm472_vm1, %v1441_v13  ;;  %v811_v27 = vsub.s32 2, %v1523_v63 }
  0x20   : > { %1244 = vmatprep.subr.mxu0 %v1135_v28  ;;  %1262 = vmatprep.mubr.msk.f32.mxu0 %vm472_vm1, %v644_v29  ;;  %vm767_vm5 = vcmp.lt.s32.totalorder %v1612_v23, 120  ;;  %vm766_vm7 = vcmp.ge.s32.totalorder %v1612_v23, 8 }
  0x21   : > { %1245 = vmatpush3.msra.mxu0 %v1135_v28  ;;  %1265 = vmatprep.subr.mxu1 %v946_v57  ;;  %v768_v28 = vld [vmem:[%s1703_s5] sm:$0xff]  ;;  %vm805_vm8 = vmand %vm762_vm6, %vm767_vm5 }
  0x22   : > { %1246 = vmatprep.subr.mxu0 %v1134_v30  ;;  %1266 = vmatpush3.msra.mxu1 %v946_v57  ;;  %v796_v29 = vrot.slane %v768_v28, %v795_v24  ;;  %vm779_vm9 = vmand %vm762_vm6, %vm766_vm7 }
  0x23   : > { %1247 = vmatpush3.msra.mxu0 %v1134_v30  ;;  %1267 = vmatprep.subr.mxu1 %v945_v60  ;;  %v786_v30 = vrot.slane %v768_v28, %v785_v25 }
  0x24   : > { %1248 = vmatprep.subr.mxu0 %v1133_v31  ;;  %1268 = vmatpush3.msra.mxu1 %v945_v60  ;;  %v878_v60 = vsub.s32 7, %v1523_v63 }
  0x25   : > { %1249 = vmatpush3.msra.mxu0 %v1133_v31  ;;  %1269 = vmatprep.subr.mxu1 %v944_v0 }
  0x26   : > { %1250 = vmatprep.subr.mxu0 %v1132_v32  ;;  %1270 = vmatpush3.msra.mxu1 %v944_v0 }
  0x27   : > { %1251 = vmatpush3.msra.mxu0 %v1132_v32  ;;  %1271 = vmatprep.subr.mxu1 %v943_v2  ;;  %v812_v32 = vrot.slane %v768_v28, %v811_v27 }
  0x28   : > { %1252 = vmatprep.subr.mxu0 %v1131_v33  ;;  %1272 = vmatpush3.msra.mxu1 %v943_v2 }
  0x29   : > { %1253 = vmatpush3.msra.mxu0 %v1131_v33  ;;  %1273 = vmatprep.subr.mxu1 %v942_v5 }
  0x2a   : > { %1254 = vmatprep.subr.mxu0 %v1130_v34  ;;  %1274 = vmatpush3.msra.mxu1 %v942_v5 }
  0x2b   : > { %1255 = vmatpush3.msra.mxu0 %v1130_v34  ;;  %1275 = vmatprep.subr.mxu1 %v941_v7 }
  0x2c   : > { %1256 = vmatprep.subr.mxu0 %v1129_v35  ;;  %1276 = vmatpush3.msra.mxu1 %v941_v7 }
  0x2d   : > { %1257 = vmatpush3.msra.mxu0 %v1129_v35  ;;  %1277 = vmatprep.subr.mxu1 %v940_v8  ;;  %v825_v35 = vsub.s32 3, %v1523_v63 }
  0x2e   : > { %1258 = vmatprep.subr.mxu0 %v1128_v37  ;;  %1278 = vmatpush3.msra.mxu1 %v940_v8 }
  0x2f   : > { %1259 = vmatpush3.msra.mxu0 %v1128_v37  ;;  %1279 = vmatprep.subr.mxu1 %v939_v10 }
  0x30   : > { %1260 = vmatprep.subr.mxu0 %v1127_v38  ;;  %1280 = vmatpush3.msra.mxu1 %v939_v10 }
  0x31   : > { %1261 = vmatpush3.msra.mxu0 %v1127_v38  ;;  %1281 = vmatprep.subr.mxu1 %v938_v12 }
  0x32   : > { %1263 = vmatmul.mubr.msk.f32.vlgmr.msra.gmra.mxu0 %vm472_vm1, %v646_v39  ;;  %1282 = vmatpush3.msra.mxu1 %v938_v12 }
  0x33   : > { %1283 = vmatprep.subr.mxu1 %v937_v14 }
  0x34   : > { %1284 = vmatpush3.msra.mxu1 %v937_v14 }
  0x35   : > { %1285 = vmatprep.subr.mxu1 %v936_v16 }
  0x36   : > { %1286 = vmatpush3.msra.mxu1 %v936_v16 }
  0x37   : > { %1287 = vmatprep.subr.mxu1 %v935_v18 }
  0x38   : > { %1288 = vmatpush3.msra.mxu1 %v935_v18 }
  0x39   : > { %1289 = vmatprep.subr.mxu1 %v934_v19 }
  0x3a   : > { %1290 = vmatpush3.msra.mxu1 %v934_v19 }
  0x3b   : > { %1291 = vmatprep.subr.mxu1 %v933_v20 }
  0x3c   : > { %1292 = vmatpush3.msra.mxu1 %v933_v20 }
  0x3d   : > { %1293 = vmatprep.subr.mxu1 %v932_v21 }
  0x3e   : > { %1294 = vmatpush3.msra.mxu1 %v932_v21 }
  0x3f   : > { %1295 = vmatprep.subr.mxu1 %v931_v22 }
  0x40   : > { %1296 = vmatpush3.msra.mxu1 %v931_v22 }
  0xdf   : > { %v1222_v40 = vpop.f32.mrf.mxu0  ;;  %v1243_v41 = vpop.f32.mrf.mxu1 }
  0xe0   : > { %v628_v44 = vadd.f32 %v1243_v41, %v1222_v40  ;;  %v833_v40 = vsub.s32 4, %v1523_v63 }
  0xe1   : > { %v543_v42 = vpop.f32.mrf.mxu0  ;;  %v622_v43 = vpop.f32.mrf.mxu1 }
  0xe2   : > { %v623_v47 = vadd.f32 %v622_v43, %v543_v42 }
  0xf2   : > { %v1264_v45 = vpop.f32.mrf.mxu0 }
  0xf3   : > { %v727_v48 = vadd.f32 %v1264_v45, %v628_v44  ;;  %v826_v45 = vrot.slane %v768_v28, %v825_v35 }
  0xf4   : > { %v717_v49 = vpop.f32.mrf.mxu0 }
  0xf5   : > { %v736_v50 = vadd.f32 %v1138_v46, %v727_v48  ;;  %v726_v51 = vadd.f32 %v717_v49, %v623_v47  ;;  %v759_v48 = vadd.s32 8, %v1523_v63 }
  0xf7   : > { %v738_v53 = vmax.f32 %v736_v50, 0.0  ;;  %v735_v54 = vadd.f32 %v1138_v46, %v726_v51  ;;  %v847_v51 = vsub.s32 5, %v1523_v63  ;;  %vm765_vm10 = vcmp.lt.s32.totalorder %v759_v48, 15 }
  0xf8   : > { %vm1646_vm11 = vmand %vm765_vm10, %vm766_vm7 }
  0xf9   : > { %v747_v58 = vmul.f32 %v1139_v52, %v738_v53  ;;  %v737_v59 = vmax.f32 %v735_v54, 0.0  ;;  %v834_v54 = vrot.slane %v768_v28, %v833_v40  ;;  %vm889_vm12 = vmand %vm765_vm10, %vm767_vm5 }
  0xfb   : > { %v1520_v61 = vadd.f32 %v1140_v55, %v747_v58  ;;  %v746_v62 = vmul.f32 %v1139_v52, %v737_v59  ;;  %v868_v59 = vsub.s32 6, %v1523_v63 }
  0xfd   : > { %v1528_v1 = vadd.f32 %v1140_v55, %v746_v62  ;;  %819 = vrot.lane.b32.xlu1 %v1520_v61, %s1319_s20  ;;  %v771_v4 = vrot.slane %v1520_v61, 7  ;;  %v854_v13 = vrot.slane %v1520_v61, 1 }
  0xff   : > { %v770_v3 = vrot.slane %v1528_v1, 7  ;;  %v853_v11 = vrot.slane %v1528_v1, 1 }
 0x101   : > { %v1543_v6 = vsel %vm772_vm3, %v771_v4, %v770_v3  ;;  %v1557_v9 = vsel %vm772_vm3, %v770_v3, %v771_v4  ;;  %v1579_v15 = vsel %vm855_vm4, %v854_v13, %v853_v11  ;;  %v1588_v17 = vsel %vm855_vm4, %v853_v11, %v854_v13 }
 0x102   : > { %801 = vrot.lane.b32.xlu1 %v1543_v6, %s1320_s27  ;;  %775 = vrot.lane.b32.xlu0 %v1543_v6, %s1319_s20  ;;  %v791_v31 = vsel %vm762_vm6, %v1543_v6, 0.0  ;;  %v798_v49 = vmul.f32 %v796_v29, %v1557_v9  ;;  %v848_v3 = vrot.slane %v768_v28, %v847_v51  ;;  %v836_v6 = vmul.f32 %v834_v54, %v1520_v61 }
 0x103   : > { %v797_v39 = vmul.f32 %v796_v29, %v791_v31  ;;  %v835_v11 = vmul.f32 %v834_v54, %v1528_v1  ;;  %v879_v13 = vrot.slane %v768_v28, %v878_v60  ;;  %v875_v22 = vsel %vm765_vm10, %v1579_v15, 0.0  ;;  %v1141_v29 = vld [vmem:[%s1703_s5 + $0x8] ss:$0 sm:$0xff] }
 0x105   : > { %v880_v35 = vmul.f32 %v879_v13, %v1588_v17 }
 0x106   : > { %803 = vrot.lane.b32.xlu1 %v1557_v9, %s1320_s27  ;;  %777 = vrot.lane.b32.xlu0 %v1557_v9, %s1319_s20  ;;  %v869_v9 = vrot.slane %v768_v28, %v868_v59 }
 0x10a   : > { %841 = vrot.lane.b32.xlu1 %v1520_v61, %s1320_s27  ;;  %817 = vrot.lane.b32.xlu0 %v1528_v1, %s1319_s20 }
 0x10e   : > { %860 = vrot.lane.b32.xlu1 %v1579_v15, %s1319_s20  ;;  %839 = vrot.lane.b32.xlu0 %v1528_v1, %s1320_s27 }
 0x112   : > { %886 = vrot.lane.b32.xlu1 %v1579_v15, %s1320_s27  ;;  %858 = vrot.lane.b32.xlu0 %v1588_v17, %s1319_s20 }
 0x116   : > { %884 = vrot.lane.b32.xlu0 %v1588_v17, %s1320_s27  ;;  %v1143_v17 = vld [vmem:[%s1705_s7] ss:$0 sm:$0xff] }
 0x16f   : > { %v820_v26 = vpop.permute.xlu1 %819 }
 0x170   : > { %v822_v53 = vsel %vm766_vm7, %v820_v26, 0.0 }
 0x171   : > { %v828_v0 = vmul.f32 %v826_v45, %v822_v53 }
 0x174   : > { %v802_v33 = vpop.permute.xlu1 %801  ;;  %v776_v34 = vpop.permute.xlu0 %775 }
 0x175   : > { %v807_v36 = vsel %vm805_vm8, %v802_v33, 0.0  ;;  %v781_v37 = vsel %vm779_vm9, %v776_v34, 0.0 }
 0x176   : > { %v787_v38 = vmul.f32 %v786_v30, %v781_v37  ;;  %v813_v41 = vmul.f32 %v812_v32, %v807_v36 }
 0x178   : > { %v799_v42 = vadd.f32 %v797_v39, %v787_v38  ;;  %v804_v43 = vpop.permute.xlu1 %803  ;;  %v778_v44 = vpop.permute.xlu0 %777  ;;  %v1142_v39 = vld [vmem:[%s1704_s6] ss:$0 sm:$0xff] }
 0x179   : > { %v808_v46 = vsel %vm767_vm5, %v804_v43, 0.0  ;;  %v782_v47 = vsel %vm766_vm7, %v778_v44, 0.0 }
 0x17a   : > { %v788_v50 = vmul.f32 %v786_v30, %v782_v47  ;;  %v815_v52 = vadd.f32 %v813_v41, %v799_v42  ;;  %v814_v55 = vmul.f32 %v812_v32, %v808_v46  ;;  %v881_v32 = vmul.f32 %v879_v13, %v875_v22 }
 0x17c   : > { %v800_v56 = vadd.f32 %v798_v49, %v788_v50  ;;  %v842_v57 = vpop.permute.xlu1 %841  ;;  %v818_v58 = vpop.permute.xlu0 %817  ;;  %v1144_v50 = vld [vmem:[%s1706_s8] ss:$0 sm:$0xff] }
 0x17d   : > { %v821_v62 = vsel %vm766_vm7, %v818_v58, 0.0  ;;  %v844_v63 = vsel %vm767_vm5, %v842_v57, 0.0  ;;  %v1146_v58 = vld [vmem:[%s1709_s11] ss:$0 sm:$0xff] }
 0x17e   : > { %v816_v2 = vadd.f32 %v814_v55, %v800_v56  ;;  %v827_v4 = vmul.f32 %v826_v45, %v821_v62  ;;  %v850_v19 = vmul.f32 %v848_v3, %v844_v63  ;;  %v1145_v55 = vld [vmem:[%s1708_s10] ss:$0 sm:$0xff] }
 0x180   : > { %v830_v7 = vadd.f32 %v828_v0, %v816_v2  ;;  %v829_v8 = vadd.f32 %v827_v4, %v815_v52  ;;  %v861_v10 = vpop.permute.xlu1 %860  ;;  %v840_v12 = vpop.permute.xlu0 %839 }
 0x181   : > { %v865_v14 = vsel %vm1646_vm11, %v861_v10, 0.0  ;;  %v843_v16 = vsel %vm767_vm5, %v840_v12, 0.0 }
 0x182   : > { %v838_v18 = vadd.f32 %v836_v6, %v830_v7  ;;  %v837_v20 = vadd.f32 %v835_v11, %v829_v8  ;;  %v849_v21 = vmul.f32 %v848_v3, %v843_v16  ;;  %v871_v25 = vmul.f32 %v869_v9, %v865_v14 }
 0x184   : > { %v852_v24 = vadd.f32 %v850_v19, %v838_v18  ;;  %v851_v26 = vadd.f32 %v849_v21, %v837_v20  ;;  %v887_v27 = vpop.permute.xlu1 %886  ;;  %v859_v28 = vpop.permute.xlu0 %858 }
 0x185   : > { %v891_v30 = vsel %vm889_vm12, %v887_v27, 0.0  ;;  %v864_v31 = vsel %vm766_vm7, %v859_v28, 0.0 }
 0x186   : > { %v873_v33 = vadd.f32 %v871_v25, %v852_v24  ;;  %v870_v34 = vmul.f32 %v869_v9, %v864_v31  ;;  %v897_v15 = vmul.f32 %v1141_v29, %v891_v30 }
 0x188   : > { %v883_v36 = vadd.f32 %v881_v32, %v873_v33  ;;  %v872_v37 = vadd.f32 %v870_v34, %v851_v26  ;;  %v885_v38 = vpop.permute.xlu0 %884 }
 0x189   : > { %v890_v40 = vsel %vm767_vm5, %v885_v38, 0.0 }
 0x18a   : > { %v899_v41 = vadd.f32 %v897_v15, %v883_v36  ;;  %v882_v42 = vadd.f32 %v880_v35, %v872_v37  ;;  %v896_v43 = vmul.f32 %v1141_v29, %v890_v40 }
 0x18c   : > { %v908_v44 = vadd.f32 %v1142_v39, %v899_v41  ;;  %v898_v45 = vadd.f32 %v896_v43, %v882_v42 }
 0x18e   : > { %v910_v46 = vmax.f32 %v908_v44, 0.0  ;;  %v907_v47 = vadd.f32 %v1142_v39, %v898_v45 }
 0x190   : > { %v919_v48 = vmul.f32 %v1143_v17, %v910_v46  ;;  %v909_v49 = vmax.f32 %v907_v47, 0.0 }
 0x192   : > { %v918_v23 = vmul.f32 %v1143_v17, %v909_v49  ;;  %v928_v51 = vadd.f32 %v1144_v50, %v919_v48 }
 0x194   : > { %v927_v52 = vadd.f32 %v1144_v50, %v918_v23  ;;  %v930_v54 = vadd.f32 %v928_v51, %v1520_v61  ;;  %v1147_v61 = vld [vmem:[%s1710_s12] ss:$0 sm:$0xff] }
 0x196   : > { %v929_v53 = vadd.f32 %v927_v52, %v1528_v1 }
 0x198   : > { %1297 = vmatprep.mubr.f32.mxu1 %v929_v53 }
 0x199   : > { %1298 = vmatmul.mubr.f32.vlgmr.msra.gmra.mxu1 %v930_v54 }
 0x259   : > { %v1299_v56 = vpop.f32.mrf.mxu1 }
 0x25a   : > { %v1026_v57 = vadd.f32 %v1299_v56, %v1145_v55 }
 0x25b   : > { %v1020_v59 = vpop.f32.mrf.mxu1 }
 0x25c   : > { %v1030_v60 = vmax.f32 %v1026_v57, 0.0  ;;  %v1021_v62 = vadd.f32 %v1145_v55, %v1020_v59 }
 0x25e   : > { %v1039_v1 = vmul.f32 %v1146_v58, %v1030_v60  ;;  %v1029_v0 = vmax.f32 %v1021_v62, 0.0 }
 0x260   : > { %v1048_v2 = vadd.f32 %v1147_v61, %v1039_v1  ;;  %v1038_v3 = vmul.f32 %v1146_v58, %v1029_v0 }
 0x262   : > { %1050 = vst [vmem:[%s440_s23 + $0x8] sm:$0xff] %v1048_v2  ;;  %v1047_v4 = vadd.f32 %v1147_v61, %v1038_v3 }
 0x264   : > { %1049 = vst [vmem:[%s440_s23] sm:$0xff] %v1047_v4 }
 0x265 PF: > { %s23_s25 = sadd.s32 1, %s1317_s25  }
 0x266   : > { %p20_p4 = scmp.ge.s32.totalorder %s23_s25, 4  }
 0x268   :  { %22 = sbr.rel (!%p20_p4) target bundleno = 1 (0x1), region = 104 }

</bundles_post_ra>
